<compile_context>
chip_gen: v7x
topology: tpu7x:2x2x1
jax: 0.10.0
libtpu: 0.0.40
codegen_flags: <defaults>
</compile_context>

<pallas_src>
import numpy as np
import jax
import jax.numpy as jnp
from jax.experimental import pallas as pl
from jax.experimental.pallas import tpu as pltpu


TB = 8  # images per grid step; must be a multiple of 8 (sublane tile)


# ----------------------------- fused kernel -------------------------------- #

def _polnet_kernel(x_ref, a1_ref, b1_ref, a2_ref, b2_ref,
                   bf1_ref, bb1_ref, w2_ref, bb2_ref, w3_ref, bb3_ref,
                   o_ref):
    f32, bf16 = jnp.float32, jnp.bfloat16
    tb = x_ref.shape[1]

    # Activation layout throughout: 2-D, rows = h*TB + batch, lanes = w*C.
    xf = x_ref[...].reshape(32 * tb, 96)                       # free relabel (f32)

    # ---- conv1 (5x5, 3->6) + bias + ReLU: one N=256 dot per kernel row;
    #      lanes [0,84) = even output columns, [128,212) = odd ones. ----
    acc1 = jnp.zeros((28 * tb, 256), f32)
    for i in range(5):                                         # kernel rows (unrolled)
        xi = xf[i * tb:(i + 28) * tb].astype(bf16)             # (28*TB, 96)
        acc1 = acc1 + jnp.dot(xi, a1_ref[i], preferred_element_type=f32)
    c1 = jnp.maximum(acc1 + b1_ref[...], 0.0)
    # 2x2 max-pool: width = max of the two 128-lane halves, height = max of
    # even/odd row groups (tile-aligned sublane slices).
    lp1 = jnp.maximum(c1[:, :128], c1[:, 128:])                # (28*TB, 128)
    t1 = lp1.reshape(14, 2 * tb, 128)
    p1 = jnp.maximum(t1[:, :tb, :], t1[:, tb:, :]).reshape(14 * tb, 128)

    # ---- conv2 (5x5, 6->16) + bias + ReLU + pool (same trick; K padded 84->128) ----
    acc2 = jnp.zeros((10 * tb, 256), f32)
    for i in range(5):
        pi = p1[i * tb:(i + 10) * tb].astype(bf16)             # (10*TB, 128)
        acc2 = acc2 + jnp.dot(pi, a2_ref[i], preferred_element_type=f32)
    c2 = jnp.maximum(acc2 + b2_ref[...], 0.0)
    lp2 = jnp.maximum(c2[:, :128], c2[:, 128:])                # (10*TB, 128)
    t2 = lp2.reshape(5, 2 * tb, 128)
    p2 = jnp.maximum(t2[:, :tb, :], t2[:, tb:, :])             # (5, TB, 128)

    # ---- FC head: batch fills M; the NCHW flatten lives in the bf1 slabs ----
    h1 = jnp.zeros((tb, 128), f32)
    for r in range(5):
        h1 = h1 + jnp.dot(p2[r].astype(bf16), bf1_ref[r],
                          preferred_element_type=f32)
    h1 = jnp.maximum(h1 + bb1_ref[...], 0.0)                   # (TB,128); 120 valid
    h2 = jnp.maximum(jnp.dot(h1.astype(bf16), w2_ref[...],
                             preferred_element_type=f32) + bb2_ref[...], 0.0)
    out = jnp.dot(h2.astype(bf16), w3_ref[...],
                  preferred_element_type=f32) + bb3_ref[...]
    o_ref[...] = out.astype(o_ref.dtype)                       # (TB,128); lanes 10.. pad


# ------------------------ one-time weight repacking ------------------------ #

def _banded_conv_weights_fused(w, w_in, pad_k_to=None):
    """Banded matmul weight fusing im2col along W, the even/odd output-column
    split of the following 2x2 max-pool, and 128-lane padding of each bank.
    Activation rows have lane = w*ic + c.  Returns (kh, K, 256)."""
    oc, ic, kh, kw = w.shape
    ow = w_in - kw + 1
    owh = ow // 2
    K = pad_k_to if pad_k_to is not None else w_in * ic
    # k[i, j*ic + c, o] = w[o, c, i, j]
    k = np.transpose(w, (2, 3, 1, 0)).reshape(kh, kw * ic, oc).astype(np.float32)
    a = np.zeros((kh, K, 256), np.float32)
    for i in range(kh):
        for parity, base in ((0, 0), (1, 128)):
            for pw in range(owh):
                r0 = (2 * pw + parity) * ic
                a[i, r0:r0 + kw * ic, base + pw * oc: base + (pw + 1) * oc] = k[i]
    return a


def _conv_bias_lanes(b, owh):
    v = np.zeros((1, 256), np.float32)
    t = np.tile(np.asarray(b, np.float32), owh)
    v[0, :t.size] = t
    v[0, 128:128 + t.size] = t
    return v


def pack_params(params):
    """Host-side, once-per-model repack of PyTorch-layout parameters into the
    layouts the fused kernel consumes.  Matmul weights are stored as bf16
    (native MXU input); biases stay f32."""
    w1 = np.asarray(params["conv1_w"], np.float32)
    b1 = np.asarray(params["conv1_b"], np.float32)
    w2 = np.asarray(params["conv2_w"], np.float32)
    b2 = np.asarray(params["conv2_b"], np.float32)
    f1w = np.asarray(params["fc1_w"], np.float32)
    f1b = np.asarray(params["fc1_b"], np.float32)
    f2w = np.asarray(params["fc2_w"], np.float32)
    f2b = np.asarray(params["fc2_b"], np.float32)
    f3w = np.asarray(params["fc3_w"], np.float32)
    f3b = np.asarray(params["fc3_b"], np.float32)

    a1 = _banded_conv_weights_fused(w1, 32)                  # (5, 96, 256)
    a2 = _banded_conv_weights_fused(w2, 14, pad_k_to=128)    # (5, 128, 256)
    b1p = _conv_bias_lanes(b1, 14)                           # 84 valid per half
    b2p = _conv_bias_lanes(b2, 5)                            # 80 valid per half

    # fc1 slabs: bf1[h, w*16 + c, n] = f1w[n, c*25 + h*5 + w]; pad to (5,128,128)
    bf1 = np.zeros((5, 128, 128), np.float32)
    bf1[:, :80, :120] = np.transpose(
        f1w.reshape(120, 16, 5, 5), (2, 3, 1, 0)).reshape(5, 80, 120)
    bb1 = np.zeros((1, 128), np.float32); bb1[0, :120] = f1b

    w2p = np.zeros((128, 128), np.float32); w2p[:120, :84] = f2w.T
    bb2 = np.zeros((1, 128), np.float32); bb2[0, :84] = f2b
    w3p = np.zeros((128, 128), np.float32); w3p[:84, :10] = f3w.T
    bb3 = np.zeros((1, 128), np.float32); bb3[0, :10] = f3b

    mats = {"a1": a1, "a2": a2, "bf1": bf1, "w2": w2p, "w3": w3p}
    vecs = {"b1": b1p, "b2": b2p, "bb1": bb1, "bb2": bb2, "bb3": bb3}
    packed = {k: jnp.asarray(v, jnp.bfloat16) for k, v in mats.items()}
    packed.update({k: jnp.asarray(v, jnp.float32) for k, v in vecs.items()})
    return packed


_WEIGHT_ORDER = ("a1", "b1", "a2", "b2", "bf1", "bb1", "w2", "bb2", "w3", "bb3")


# -------------------------------- forward ---------------------------------- #

def polnet_forward_hbc(packed, x_hbc, batch):
    """Core entry: x_hbc is (32, Bp, 96) f32 with Bp a multiple of TB
    (rows = H, sublanes = batch, lanes = W*C).  Returns (batch, 10)."""
    Bp = x_hbc.shape[1]
    weights = [packed[k] for k in _WEIGHT_ORDER]

    def full_spec(arr):
        nd = arr.ndim
        return pl.BlockSpec(arr.shape, lambda b, _n=nd: (0,) * _n)

    flops_per_img = 2 * (5 * 28 * 96 * 256 + 5 * 10 * 128 * 256
                         + 5 * 128 * 128 + 128 * 128 + 128 * 128)
    bytes_weights = sum(int(w.size) * w.dtype.itemsize for w in weights)
    cost = pl.CostEstimate(
        flops=Bp * flops_per_img, transcendentals=0,
        bytes_accessed=bytes_weights + Bp * (32 * 96 + 128) * 4)

    out = pl.pallas_call(
        _polnet_kernel,
        grid=(Bp // TB,),
        in_specs=[pl.BlockSpec((32, TB, 96), lambda b: (0, b, 0))]
                 + [full_spec(w) for w in weights],
        out_specs=pl.BlockSpec((TB, 128), lambda b: (b, 0)),
        out_shape=jax.ShapeDtypeStruct((Bp, 128), jnp.float32),
        compiler_params=pltpu.CompilerParams(
            dimension_semantics=("parallel",)),
        cost_estimate=cost,
    )(x_hbc, *weights)
    return out[:batch, :10]


def polnet_forward(packed, x_nchw):
    """PyTorch-parity entry: x is NCHW (B, 3, 32, 32).  The single small
    transpose to the (H, B, W*C) layout is the only non-kernel work; feed
    polnet_forward_hbc directly with pre-laid-out inputs to avoid it."""
    B = x_nchw.shape[0]
    Bp = ((B + TB - 1) // TB) * TB
    x = jnp.transpose(x_nchw, (0, 2, 3, 1))          # NHWC
    x = jnp.transpose(x, (1, 0, 2, 3)).reshape(32, B, 96)
    if Bp != B:
        x = jnp.pad(x, ((0, 0), (0, Bp - B), (0, 0)))
    return polnet_forward_hbc(packed, x, B)


# ------------------------------- init / main -------------------------------- #

def init_params(key):
    ks = jax.random.split(key, 10)

    def u(k, shape, fan_in):  # PyTorch default-ish uniform(-1/sqrt(fan_in), ...)
        bound = 1.0 / jnp.sqrt(jnp.float32(fan_in))
        return jax.random.uniform(k, shape, jnp.float32, -bound, bound)

    return {
        "conv1_w": u(ks[0], (6, 3, 5, 5), 3 * 5 * 5),
        "conv1_b": u(ks[1], (6,), 3 * 5 * 5),
        "conv2_w": u(ks[2], (16, 6, 5, 5), 6 * 5 * 5),
        "conv2_b": u(ks[3], (16,), 6 * 5 * 5),
        "fc1_w": u(ks[4], (120, 400), 400),
        "fc1_b": u(ks[5], (120,), 400),
        "fc2_w": u(ks[6], (84, 120), 120),
        "fc2_b": u(ks[7], (84,), 120),
        "fc3_w": u(ks[8], (10, 84), 84),
        "fc3_b": u(ks[9], (10,), 84),
    }


if __name__ == "__main__":
    key = jax.random.PRNGKey(0)
    pkey, xkey = jax.random.split(key)
    params = init_params(pkey)
    packed = pack_params(params)                 # one-time host-side repack
    # 32x32x3 inputs (required by the 16*5*5 flatten); B=16 -> two grid steps
    # of TB=8 so the "parallel" batch axis can split across v7x TensorCores.
    x = jax.random.normal(xkey, (16, 3, 32, 32), jnp.float32)
    out = jax.jit(polnet_forward)(packed, x)
    jax.block_until_ready(out)
    assert out.shape == (16, 10) and out.dtype == jnp.float32
    assert bool(jnp.all(jnp.isfinite(out)))
    print("KERNEL_OK")
</pallas_src>

<mosaic_0001>
module attributes {stable_mosaic.version = 11 : i64} {
  func.func @_polnet_kernel(%arg0: i32, %arg1: memref<32x8x96xf32, #tpu.memory_space<vmem>>, %arg2: memref<5x96x256xbf16, #tpu.memory_space<vmem>>, %arg3: memref<1x256xf32, #tpu.memory_space<vmem>>, %arg4: memref<5x128x256xbf16, #tpu.memory_space<vmem>>, %arg5: memref<1x256xf32, #tpu.memory_space<vmem>>, %arg6: memref<5x128x128xbf16, #tpu.memory_space<vmem>>, %arg7: memref<1x128xf32, #tpu.memory_space<vmem>>, %arg8: memref<128x128xbf16, #tpu.memory_space<vmem>>, %arg9: memref<1x128xf32, #tpu.memory_space<vmem>>, %arg10: memref<128x128xbf16, #tpu.memory_space<vmem>>, %arg11: memref<1x128xf32, #tpu.memory_space<vmem>>, %arg12: memref<8x128xf32, #tpu.memory_space<vmem>>) attributes {dimension_semantics = [#tpu.dimension_semantics<parallel>], iteration_bounds = array<i64: 2>, scalar_prefetch = 0 : i64, scratch_operands = 0 : i64, tpu.core_type = #tpu.core_type<tc>, window_params = [{transform_indices = @transform_0, window_bounds = array<i64: 32, 8, 96>}, {pipeline_mode = #tpu.pipeline_mode<synchronous>, transform_indices = @transform_1, window_bounds = array<i64: 5, 96, 256>}, {pipeline_mode = #tpu.pipeline_mode<synchronous>, transform_indices = @transform_2, window_bounds = array<i64: 1, 256>}, {pipeline_mode = #tpu.pipeline_mode<synchronous>, transform_indices = @transform_3, window_bounds = array<i64: 5, 128, 256>}, {pipeline_mode = #tpu.pipeline_mode<synchronous>, transform_indices = @transform_4, window_bounds = array<i64: 1, 256>}, {pipeline_mode = #tpu.pipeline_mode<synchronous>, transform_indices = @transform_5, window_bounds = array<i64: 5, 128, 128>}, {pipeline_mode = #tpu.pipeline_mode<synchronous>, transform_indices = @transform_6, window_bounds = array<i64: 1, 128>}, {pipeline_mode = #tpu.pipeline_mode<synchronous>, transform_indices = @transform_7, window_bounds = array<i64: 128, 128>}, {pipeline_mode = #tpu.pipeline_mode<synchronous>, transform_indices = @transform_8, window_bounds = array<i64: 1, 128>}, {pipeline_mode = #tpu.pipeline_mode<synchronous>, transform_indices = @transform_9, window_bounds = array<i64: 128, 128>}, {pipeline_mode = #tpu.pipeline_mode<synchronous>, transform_indices = @transform_10, window_bounds = array<i64: 1, 128>}, {transform_indices = @transform_11, window_bounds = array<i64: 8, 128>}]} {
    %c0 = arith.constant 0 : index
    %c0_0 = arith.constant 0 : index
    %c0_1 = arith.constant 0 : index
    %0 = vector.load %arg1[%c0, %c0_0, %c0_1] : memref<32x8x96xf32, #tpu.memory_space<vmem>>, vector<32x8x96xf32>
    %1 = vector.shape_cast %0 : vector<32x8x96xf32> to vector<256x96xf32>
    %cst = arith.constant 0.000000e+00 : f32
    %2 = vector.broadcast %cst : f32 to vector<224x256xf32>
    %3 = vector.extract_strided_slice %1 {offsets = [0, 0], sizes = [224, 96], strides = [1, 1]} : vector<256x96xf32> to vector<224x96xf32>
    %4 = arith.truncf %3 : vector<224x96xf32> to vector<224x96xbf16>
    %c0_2 = arith.constant 0 : index
    %c0_3 = arith.constant 0 : index
    %c0_4 = arith.constant 0 : index
    %5 = vector.load %arg2[%c0_2, %c0_3, %c0_4] : memref<5x96x256xbf16, #tpu.memory_space<vmem>>, vector<1x96x256xbf16>
    %6 = vector.shape_cast %5 : vector<1x96x256xbf16> to vector<96x256xbf16>
    %cst_5 = arith.constant dense<0.000000e+00> : vector<224x256xf32>
    %7 = tpu.matmul %4, %6, %cst_5 {dimension_numbers = #tpu.dot_dimension_numbers<[1], [0], [0], [1], [0, 0, 1, 1], [], []>} : vector<224x96xbf16>, vector<96x256xbf16>, vector<224x256xf32> -> vector<224x256xf32>
    %8 = arith.addf %2, %7 : vector<224x256xf32>
    %9 = vector.extract_strided_slice %1 {offsets = [8, 0], sizes = [224, 96], strides = [1, 1]} : vector<256x96xf32> to vector<224x96xf32>
    %10 = arith.truncf %9 : vector<224x96xf32> to vector<224x96xbf16>
    %c1 = arith.constant 1 : index
    %c0_6 = arith.constant 0 : index
    %c0_7 = arith.constant 0 : index
    %11 = vector.load %arg2[%c1, %c0_6, %c0_7] : memref<5x96x256xbf16, #tpu.memory_space<vmem>>, vector<1x96x256xbf16>
    %12 = vector.shape_cast %11 : vector<1x96x256xbf16> to vector<96x256xbf16>
    %cst_8 = arith.constant dense<0.000000e+00> : vector<224x256xf32>
    %13 = tpu.matmul %10, %12, %cst_8 {dimension_numbers = #tpu.dot_dimension_numbers<[1], [0], [0], [1], [0, 0, 1, 1], [], []>} : vector<224x96xbf16>, vector<96x256xbf16>, vector<224x256xf32> -> vector<224x256xf32>
    %14 = arith.addf %8, %13 : vector<224x256xf32>
    %15 = vector.extract_strided_slice %1 {offsets = [16, 0], sizes = [224, 96], strides = [1, 1]} : vector<256x96xf32> to vector<224x96xf32>
    %16 = arith.truncf %15 : vector<224x96xf32> to vector<224x96xbf16>
    %c2 = arith.constant 2 : index
    %c0_9 = arith.constant 0 : index
    %c0_10 = arith.constant 0 : index
    %17 = vector.load %arg2[%c2, %c0_9, %c0_10] : memref<5x96x256xbf16, #tpu.memory_space<vmem>>, vector<1x96x256xbf16>
    %18 = vector.shape_cast %17 : vector<1x96x256xbf16> to vector<96x256xbf16>
    %cst_11 = arith.constant dense<0.000000e+00> : vector<224x256xf32>
    %19 = tpu.matmul %16, %18, %cst_11 {dimension_numbers = #tpu.dot_dimension_numbers<[1], [0], [0], [1], [0, 0, 1, 1], [], []>} : vector<224x96xbf16>, vector<96x256xbf16>, vector<224x256xf32> -> vector<224x256xf32>
    %20 = arith.addf %14, %19 : vector<224x256xf32>
    %21 = vector.extract_strided_slice %1 {offsets = [24, 0], sizes = [224, 96], strides = [1, 1]} : vector<256x96xf32> to vector<224x96xf32>
    %22 = arith.truncf %21 : vector<224x96xf32> to vector<224x96xbf16>
    %c3 = arith.constant 3 : index
    %c0_12 = arith.constant 0 : index
    %c0_13 = arith.constant 0 : index
    %23 = vector.load %arg2[%c3, %c0_12, %c0_13] : memref<5x96x256xbf16, #tpu.memory_space<vmem>>, vector<1x96x256xbf16>
    %24 = vector.shape_cast %23 : vector<1x96x256xbf16> to vector<96x256xbf16>
    %cst_14 = arith.constant dense<0.000000e+00> : vector<224x256xf32>
    %25 = tpu.matmul %22, %24, %cst_14 {dimension_numbers = #tpu.dot_dimension_numbers<[1], [0], [0], [1], [0, 0, 1, 1], [], []>} : vector<224x96xbf16>, vector<96x256xbf16>, vector<224x256xf32> -> vector<224x256xf32>
    %26 = arith.addf %20, %25 : vector<224x256xf32>
    %27 = vector.extract_strided_slice %1 {offsets = [32, 0], sizes = [224, 96], strides = [1, 1]} : vector<256x96xf32> to vector<224x96xf32>
    %28 = arith.truncf %27 : vector<224x96xf32> to vector<224x96xbf16>
    %c4 = arith.constant 4 : index
    %c0_15 = arith.constant 0 : index
    %c0_16 = arith.constant 0 : index
    %29 = vector.load %arg2[%c4, %c0_15, %c0_16] : memref<5x96x256xbf16, #tpu.memory_space<vmem>>, vector<1x96x256xbf16>
    %30 = vector.shape_cast %29 : vector<1x96x256xbf16> to vector<96x256xbf16>
    %cst_17 = arith.constant dense<0.000000e+00> : vector<224x256xf32>
    %31 = tpu.matmul %28, %30, %cst_17 {dimension_numbers = #tpu.dot_dimension_numbers<[1], [0], [0], [1], [0, 0, 1, 1], [], []>} : vector<224x96xbf16>, vector<96x256xbf16>, vector<224x256xf32> -> vector<224x256xf32>
    %32 = arith.addf %26, %31 : vector<224x256xf32>
    %c0_18 = arith.constant 0 : index
    %c0_19 = arith.constant 0 : index
    %33 = vector.load %arg3[%c0_18, %c0_19] : memref<1x256xf32, #tpu.memory_space<vmem>>, vector<1x256xf32>
    %34 = vector.broadcast %33 : vector<1x256xf32> to vector<224x256xf32>
    %35 = arith.addf %32, %34 : vector<224x256xf32>
    %cst_20 = arith.constant 0.000000e+00 : f32
    %36 = vector.broadcast %cst_20 : f32 to vector<224x256xf32>
    %37 = arith.maximumf %35, %36 : vector<224x256xf32>
    %38 = vector.extract_strided_slice %37 {offsets = [0, 0], sizes = [224, 128], strides = [1, 1]} : vector<224x256xf32> to vector<224x128xf32>
    %39 = vector.extract_strided_slice %37 {offsets = [0, 128], sizes = [224, 128], strides = [1, 1]} : vector<224x256xf32> to vector<224x128xf32>
    %40 = arith.maximumf %38, %39 : vector<224x128xf32>
    %41 = vector.shape_cast %40 : vector<224x128xf32> to vector<14x16x128xf32>
    %42 = vector.extract_strided_slice %41 {offsets = [0, 0, 0], sizes = [14, 8, 128], strides = [1, 1, 1]} : vector<14x16x128xf32> to vector<14x8x128xf32>
    %43 = vector.extract_strided_slice %41 {offsets = [0, 8, 0], sizes = [14, 8, 128], strides = [1, 1, 1]} : vector<14x16x128xf32> to vector<14x8x128xf32>
    %44 = arith.maximumf %42, %43 : vector<14x8x128xf32>
    %45 = vector.shape_cast %44 : vector<14x8x128xf32> to vector<112x128xf32>
    %cst_21 = arith.constant 0.000000e+00 : f32
    %46 = vector.broadcast %cst_21 : f32 to vector<80x256xf32>
    %47 = vector.extract_strided_slice %45 {offsets = [0, 0], sizes = [80, 128], strides = [1, 1]} : vector<112x128xf32> to vector<80x128xf32>
    %48 = arith.truncf %47 : vector<80x128xf32> to vector<80x128xbf16>
    %c0_22 = arith.constant 0 : index
    %c0_23 = arith.constant 0 : index
    %c0_24 = arith.constant 0 : index
    %49 = vector.load %arg4[%c0_22, %c0_23, %c0_24] : memref<5x128x256xbf16, #tpu.memory_space<vmem>>, vector<1x128x256xbf16>
    %50 = vector.shape_cast %49 : vector<1x128x256xbf16> to vector<128x256xbf16>
    %cst_25 = arith.constant dense<0.000000e+00> : vector<80x256xf32>
    %51 = tpu.matmul %48, %50, %cst_25 {dimension_numbers = #tpu.dot_dimension_numbers<[1], [0], [0], [1], [0, 0, 1, 1], [], []>} : vector<80x128xbf16>, vector<128x256xbf16>, vector<80x256xf32> -> vector<80x256xf32>
    %52 = arith.addf %46, %51 : vector<80x256xf32>
    %53 = vector.extract_strided_slice %45 {offsets = [8, 0], sizes = [80, 128], strides = [1, 1]} : vector<112x128xf32> to vector<80x128xf32>
    %54 = arith.truncf %53 : vector<80x128xf32> to vector<80x128xbf16>
    %c1_26 = arith.constant 1 : index
    %c0_27 = arith.constant 0 : index
    %c0_28 = arith.constant 0 : index
    %55 = vector.load %arg4[%c1_26, %c0_27, %c0_28] : memref<5x128x256xbf16, #tpu.memory_space<vmem>>, vector<1x128x256xbf16>
    %56 = vector.shape_cast %55 : vector<1x128x256xbf16> to vector<128x256xbf16>
    %cst_29 = arith.constant dense<0.000000e+00> : vector<80x256xf32>
    %57 = tpu.matmul %54, %56, %cst_29 {dimension_numbers = #tpu.dot_dimension_numbers<[1], [0], [0], [1], [0, 0, 1, 1], [], []>} : vector<80x128xbf16>, vector<128x256xbf16>, vector<80x256xf32> -> vector<80x256xf32>
    %58 = arith.addf %52, %57 : vector<80x256xf32>
    %59 = vector.extract_strided_slice %45 {offsets = [16, 0], sizes = [80, 128], strides = [1, 1]} : vector<112x128xf32> to vector<80x128xf32>
    %60 = arith.truncf %59 : vector<80x128xf32> to vector<80x128xbf16>
    %c2_30 = arith.constant 2 : index
    %c0_31 = arith.constant 0 : index
    %c0_32 = arith.constant 0 : index
    %61 = vector.load %arg4[%c2_30, %c0_31, %c0_32] : memref<5x128x256xbf16, #tpu.memory_space<vmem>>, vector<1x128x256xbf16>
    %62 = vector.shape_cast %61 : vector<1x128x256xbf16> to vector<128x256xbf16>
    %cst_33 = arith.constant dense<0.000000e+00> : vector<80x256xf32>
    %63 = tpu.matmul %60, %62, %cst_33 {dimension_numbers = #tpu.dot_dimension_numbers<[1], [0], [0], [1], [0, 0, 1, 1], [], []>} : vector<80x128xbf16>, vector<128x256xbf16>, vector<80x256xf32> -> vector<80x256xf32>
    %64 = arith.addf %58, %63 : vector<80x256xf32>
    %65 = vector.extract_strided_slice %45 {offsets = [24, 0], sizes = [80, 128], strides = [1, 1]} : vector<112x128xf32> to vector<80x128xf32>
    %66 = arith.truncf %65 : vector<80x128xf32> to vector<80x128xbf16>
    %c3_34 = arith.constant 3 : index
    %c0_35 = arith.constant 0 : index
    %c0_36 = arith.constant 0 : index
    %67 = vector.load %arg4[%c3_34, %c0_35, %c0_36] : memref<5x128x256xbf16, #tpu.memory_space<vmem>>, vector<1x128x256xbf16>
    %68 = vector.shape_cast %67 : vector<1x128x256xbf16> to vector<128x256xbf16>
    %cst_37 = arith.constant dense<0.000000e+00> : vector<80x256xf32>
    %69 = tpu.matmul %66, %68, %cst_37 {dimension_numbers = #tpu.dot_dimension_numbers<[1], [0], [0], [1], [0, 0, 1, 1], [], []>} : vector<80x128xbf16>, vector<128x256xbf16>, vector<80x256xf32> -> vector<80x256xf32>
    %70 = arith.addf %64, %69 : vector<80x256xf32>
    %71 = vector.extract_strided_slice %45 {offsets = [32, 0], sizes = [80, 128], strides = [1, 1]} : vector<112x128xf32> to vector<80x128xf32>
    %72 = arith.truncf %71 : vector<80x128xf32> to vector<80x128xbf16>
    %c4_38 = arith.constant 4 : index
    %c0_39 = arith.constant 0 : index
    %c0_40 = arith.constant 0 : index
    %73 = vector.load %arg4[%c4_38, %c0_39, %c0_40] : memref<5x128x256xbf16, #tpu.memory_space<vmem>>, vector<1x128x256xbf16>
    %74 = vector.shape_cast %73 : vector<1x128x256xbf16> to vector<128x256xbf16>
    %cst_41 = arith.constant dense<0.000000e+00> : vector<80x256xf32>
    %75 = tpu.matmul %72, %74, %cst_41 {dimension_numbers = #tpu.dot_dimension_numbers<[1], [0], [0], [1], [0, 0, 1, 1], [], []>} : vector<80x128xbf16>, vector<128x256xbf16>, vector<80x256xf32> -> vector<80x256xf32>
    %76 = arith.addf %70, %75 : vector<80x256xf32>
    %c0_42 = arith.constant 0 : index
    %c0_43 = arith.constant 0 : index
    %77 = vector.load %arg5[%c0_42, %c0_43] : memref<1x256xf32, #tpu.memory_space<vmem>>, vector<1x256xf32>
    %78 = vector.broadcast %77 : vector<1x256xf32> to vector<80x256xf32>
    %79 = arith.addf %76, %78 : vector<80x256xf32>
    %cst_44 = arith.constant 0.000000e+00 : f32
    %80 = vector.broadcast %cst_44 : f32 to vector<80x256xf32>
    %81 = arith.maximumf %79, %80 : vector<80x256xf32>
    %82 = vector.extract_strided_slice %81 {offsets = [0, 0], sizes = [80, 128], strides = [1, 1]} : vector<80x256xf32> to vector<80x128xf32>
    %83 = vector.extract_strided_slice %81 {offsets = [0, 128], sizes = [80, 128], strides = [1, 1]} : vector<80x256xf32> to vector<80x128xf32>
    %84 = arith.maximumf %82, %83 : vector<80x128xf32>
    %85 = vector.shape_cast %84 : vector<80x128xf32> to vector<5x16x128xf32>
    %86 = vector.extract_strided_slice %85 {offsets = [0, 0, 0], sizes = [5, 8, 128], strides = [1, 1, 1]} : vector<5x16x128xf32> to vector<5x8x128xf32>
    %87 = vector.extract_strided_slice %85 {offsets = [0, 8, 0], sizes = [5, 8, 128], strides = [1, 1, 1]} : vector<5x16x128xf32> to vector<5x8x128xf32>
    %88 = arith.maximumf %86, %87 : vector<5x8x128xf32>
    %cst_45 = arith.constant 0.000000e+00 : f32
    %89 = vector.broadcast %cst_45 : f32 to vector<8x128xf32>
    %90 = vector.extract_strided_slice %88 {offsets = [0, 0, 0], sizes = [1, 8, 128], strides = [1, 1, 1]} : vector<5x8x128xf32> to vector<1x8x128xf32>
    %91 = vector.shape_cast %90 : vector<1x8x128xf32> to vector<8x128xf32>
    %92 = arith.truncf %91 : vector<8x128xf32> to vector<8x128xbf16>
    %c0_46 = arith.constant 0 : index
    %c0_47 = arith.constant 0 : index
    %c0_48 = arith.constant 0 : index
    %93 = vector.load %arg6[%c0_46, %c0_47, %c0_48] : memref<5x128x128xbf16, #tpu.memory_space<vmem>>, vector<1x128x128xbf16>
    %94 = vector.shape_cast %93 : vector<1x128x128xbf16> to vector<128x128xbf16>
    %cst_49 = arith.constant dense<0.000000e+00> : vector<8x128xf32>
    %95 = tpu.matmul %92, %94, %cst_49 {dimension_numbers = #tpu.dot_dimension_numbers<[1], [0], [0], [1], [0, 0, 1, 1], [], []>} : vector<8x128xbf16>, vector<128x128xbf16>, vector<8x128xf32> -> vector<8x128xf32>
    %96 = arith.addf %89, %95 : vector<8x128xf32>
    %97 = vector.extract_strided_slice %88 {offsets = [1, 0, 0], sizes = [1, 8, 128], strides = [1, 1, 1]} : vector<5x8x128xf32> to vector<1x8x128xf32>
    %98 = vector.shape_cast %97 : vector<1x8x128xf32> to vector<8x128xf32>
    %99 = arith.truncf %98 : vector<8x128xf32> to vector<8x128xbf16>
    %c1_50 = arith.constant 1 : index
    %c0_51 = arith.constant 0 : index
    %c0_52 = arith.constant 0 : index
    %100 = vector.load %arg6[%c1_50, %c0_51, %c0_52] : memref<5x128x128xbf16, #tpu.memory_space<vmem>>, vector<1x128x128xbf16>
    %101 = vector.shape_cast %100 : vector<1x128x128xbf16> to vector<128x128xbf16>
    %cst_53 = arith.constant dense<0.000000e+00> : vector<8x128xf32>
    %102 = tpu.matmul %99, %101, %cst_53 {dimension_numbers = #tpu.dot_dimension_numbers<[1], [0], [0], [1], [0, 0, 1, 1], [], []>} : vector<8x128xbf16>, vector<128x128xbf16>, vector<8x128xf32> -> vector<8x128xf32>
    %103 = arith.addf %96, %102 : vector<8x128xf32>
    %104 = vector.extract_strided_slice %88 {offsets = [2, 0, 0], sizes = [1, 8, 128], strides = [1, 1, 1]} : vector<5x8x128xf32> to vector<1x8x128xf32>
    %105 = vector.shape_cast %104 : vector<1x8x128xf32> to vector<8x128xf32>
    %106 = arith.truncf %105 : vector<8x128xf32> to vector<8x128xbf16>
    %c2_54 = arith.constant 2 : index
    %c0_55 = arith.constant 0 : index
    %c0_56 = arith.constant 0 : index
    %107 = vector.load %arg6[%c2_54, %c0_55, %c0_56] : memref<5x128x128xbf16, #tpu.memory_space<vmem>>, vector<1x128x128xbf16>
    %108 = vector.shape_cast %107 : vector<1x128x128xbf16> to vector<128x128xbf16>
    %cst_57 = arith.constant dense<0.000000e+00> : vector<8x128xf32>
    %109 = tpu.matmul %106, %108, %cst_57 {dimension_numbers = #tpu.dot_dimension_numbers<[1], [0], [0], [1], [0, 0, 1, 1], [], []>} : vector<8x128xbf16>, vector<128x128xbf16>, vector<8x128xf32> -> vector<8x128xf32>
    %110 = arith.addf %103, %109 : vector<8x128xf32>
    %111 = vector.extract_strided_slice %88 {offsets = [3, 0, 0], sizes = [1, 8, 128], strides = [1, 1, 1]} : vector<5x8x128xf32> to vector<1x8x128xf32>
    %112 = vector.shape_cast %111 : vector<1x8x128xf32> to vector<8x128xf32>
    %113 = arith.truncf %112 : vector<8x128xf32> to vector<8x128xbf16>
    %c3_58 = arith.constant 3 : index
    %c0_59 = arith.constant 0 : index
    %c0_60 = arith.constant 0 : index
    %114 = vector.load %arg6[%c3_58, %c0_59, %c0_60] : memref<5x128x128xbf16, #tpu.memory_space<vmem>>, vector<1x128x128xbf16>
    %115 = vector.shape_cast %114 : vector<1x128x128xbf16> to vector<128x128xbf16>
    %cst_61 = arith.constant dense<0.000000e+00> : vector<8x128xf32>
    %116 = tpu.matmul %113, %115, %cst_61 {dimension_numbers = #tpu.dot_dimension_numbers<[1], [0], [0], [1], [0, 0, 1, 1], [], []>} : vector<8x128xbf16>, vector<128x128xbf16>, vector<8x128xf32> -> vector<8x128xf32>
    %117 = arith.addf %110, %116 : vector<8x128xf32>
    %118 = vector.extract_strided_slice %88 {offsets = [4, 0, 0], sizes = [1, 8, 128], strides = [1, 1, 1]} : vector<5x8x128xf32> to vector<1x8x128xf32>
    %119 = vector.shape_cast %118 : vector<1x8x128xf32> to vector<8x128xf32>
    %120 = arith.truncf %119 : vector<8x128xf32> to vector<8x128xbf16>
    %c4_62 = arith.constant 4 : index
    %c0_63 = arith.constant 0 : index
    %c0_64 = arith.constant 0 : index
    %121 = vector.load %arg6[%c4_62, %c0_63, %c0_64] : memref<5x128x128xbf16, #tpu.memory_space<vmem>>, vector<1x128x128xbf16>
    %122 = vector.shape_cast %121 : vector<1x128x128xbf16> to vector<128x128xbf16>
    %cst_65 = arith.constant dense<0.000000e+00> : vector<8x128xf32>
    %123 = tpu.matmul %120, %122, %cst_65 {dimension_numbers = #tpu.dot_dimension_numbers<[1], [0], [0], [1], [0, 0, 1, 1], [], []>} : vector<8x128xbf16>, vector<128x128xbf16>, vector<8x128xf32> -> vector<8x128xf32>
    %124 = arith.addf %117, %123 : vector<8x128xf32>
    %c0_66 = arith.constant 0 : index
    %c0_67 = arith.constant 0 : index
    %125 = vector.load %arg7[%c0_66, %c0_67] : memref<1x128xf32, #tpu.memory_space<vmem>>, vector<1x128xf32>
    %126 = vector.broadcast %125 : vector<1x128xf32> to vector<8x128xf32>
    %127 = arith.addf %124, %126 : vector<8x128xf32>
    %cst_68 = arith.constant 0.000000e+00 : f32
    %128 = vector.broadcast %cst_68 : f32 to vector<8x128xf32>
    %129 = arith.maximumf %127, %128 : vector<8x128xf32>
    %130 = arith.truncf %129 : vector<8x128xf32> to vector<8x128xbf16>
    %c0_69 = arith.constant 0 : index
    %c0_70 = arith.constant 0 : index
    %131 = vector.load %arg8[%c0_69, %c0_70] : memref<128x128xbf16, #tpu.memory_space<vmem>>, vector<128x128xbf16>
    %cst_71 = arith.constant dense<0.000000e+00> : vector<8x128xf32>
    %132 = tpu.matmul %130, %131, %cst_71 {dimension_numbers = #tpu.dot_dimension_numbers<[1], [0], [0], [1], [0, 0, 1, 1], [], []>} : vector<8x128xbf16>, vector<128x128xbf16>, vector<8x128xf32> -> vector<8x128xf32>
    %c0_72 = arith.constant 0 : index
    %c0_73 = arith.constant 0 : index
    %133 = vector.load %arg9[%c0_72, %c0_73] : memref<1x128xf32, #tpu.memory_space<vmem>>, vector<1x128xf32>
    %134 = vector.broadcast %133 : vector<1x128xf32> to vector<8x128xf32>
    %135 = arith.addf %132, %134 : vector<8x128xf32>
    %cst_74 = arith.constant 0.000000e+00 : f32
    %136 = vector.broadcast %cst_74 : f32 to vector<8x128xf32>
    %137 = arith.maximumf %135, %136 : vector<8x128xf32>
    %138 = arith.truncf %137 : vector<8x128xf32> to vector<8x128xbf16>
    %c0_75 = arith.constant 0 : index
    %c0_76 = arith.constant 0 : index
    %139 = vector.load %arg10[%c0_75, %c0_76] : memref<128x128xbf16, #tpu.memory_space<vmem>>, vector<128x128xbf16>
    %cst_77 = arith.constant dense<0.000000e+00> : vector<8x128xf32>
    %140 = tpu.matmul %138, %139, %cst_77 {dimension_numbers = #tpu.dot_dimension_numbers<[1], [0], [0], [1], [0, 0, 1, 1], [], []>} : vector<8x128xbf16>, vector<128x128xbf16>, vector<8x128xf32> -> vector<8x128xf32>
    %c0_78 = arith.constant 0 : index
    %c0_79 = arith.constant 0 : index
    %141 = vector.load %arg11[%c0_78, %c0_79] : memref<1x128xf32, #tpu.memory_space<vmem>>, vector<1x128xf32>
    %142 = vector.broadcast %141 : vector<1x128xf32> to vector<8x128xf32>
    %143 = arith.addf %140, %142 : vector<8x128xf32>
    %c0_80 = arith.constant 0 : index
    %c0_81 = arith.constant 0 : index
    %144 = vector.load %arg12[%c0_80, %c0_81] : memref<8x128xf32, #tpu.memory_space<vmem>>, vector<8x128xf32>
    tpu.vector_store %arg12[%c0_80, %c0_81], %143 {strides = array<i32>} : memref<8x128xf32, #tpu.memory_space<vmem>>, vector<8x128xf32>,
    return
  }
  func.func @transform_0(%arg0: i32) -> (i32, i32, i32) {
    %c0_i32 = arith.constant 0 : i32
    %c0_i32_0 = arith.constant 0 : i32
    %c0_i32_1 = arith.constant 0 : i32
    return %c0_i32, %arg0, %c0_i32_0 : i32, i32, i32
  }
  func.func @transform_1(%arg0: i32) -> (i32, i32, i32) {
    %c0_i32 = arith.constant 0 : i32
    %c0_i32_0 = arith.constant 0 : i32
    %c0_i32_1 = arith.constant 0 : i32
    %c0_i32_2 = arith.constant 0 : i32
    return %c0_i32, %c0_i32_0, %c0_i32_1 : i32, i32, i32
  }
  func.func @transform_2(%arg0: i32) -> (i32, i32) {
    %c0_i32 = arith.constant 0 : i32
    %c0_i32_0 = arith.constant 0 : i32
    %c0_i32_1 = arith.constant 0 : i32
    return %c0_i32, %c0_i32_0 : i32, i32
  }
  func.func @transform_3(%arg0: i32) -> (i32, i32, i32) {
    %c0_i32 = arith.constant 0 : i32
    %c0_i32_0 = arith.constant 0 : i32
    %c0_i32_1 = arith.constant 0 : i32
    %c0_i32_2 = arith.constant 0 : i32
    return %c0_i32, %c0_i32_0, %c0_i32_1 : i32, i32, i32
  }
  func.func @transform_4(%arg0: i32) -> (i32, i32) {
    %c0_i32 = arith.constant 0 : i32
    %c0_i32_0 = arith.constant 0 : i32
    %c0_i32_1 = arith.constant 0 : i32
    return %c0_i32, %c0_i32_0 : i32, i32
  }
  func.func @transform_5(%arg0: i32) -> (i32, i32, i32) {
    %c0_i32 = arith.constant 0 : i32
    %c0_i32_0 = arith.constant 0 : i32
    %c0_i32_1 = arith.constant 0 : i32
    %c0_i32_2 = arith.constant 0 : i32
    return %c0_i32, %c0_i32_0, %c0_i32_1 : i32, i32, i32
  }
  func.func @transform_6(%arg0: i32) -> (i32, i32) {
    %c0_i32 = arith.constant 0 : i32
    %c0_i32_0 = arith.constant 0 : i32
    %c0_i32_1 = arith.constant 0 : i32
    return %c0_i32, %c0_i32_0 : i32, i32
  }
  func.func @transform_7(%arg0: i32) -> (i32, i32) {
    %c0_i32 = arith.constant 0 : i32
    %c0_i32_0 = arith.constant 0 : i32
    %c0_i32_1 = arith.constant 0 : i32
    return %c0_i32, %c0_i32_0 : i32, i32
  }
  func.func @transform_8(%arg0: i32) -> (i32, i32) {
    %c0_i32 = arith.constant 0 : i32
    %c0_i32_0 = arith.constant 0 : i32
    %c0_i32_1 = arith.constant 0 : i32
    return %c0_i32, %c0_i32_0 : i32, i32
  }
  func.func @transform_9(%arg0: i32) -> (i32, i32) {
    %c0_i32 = arith.constant 0 : i32
    %c0_i32_0 = arith.constant 0 : i32
    %c0_i32_1 = arith.constant 0 : i32
    return %c0_i32, %c0_i32_0 : i32, i32
  }
  func.func @transform_10(%arg0: i32) -> (i32, i32) {
    %c0_i32 = arith.constant 0 : i32
    %c0_i32_0 = arith.constant 0 : i32
    %c0_i32_1 = arith.constant 0 : i32
    return %c0_i32, %c0_i32_0 : i32, i32
  }
  func.func @transform_11(%arg0: i32) -> (i32, i32) {
    %c0_i32 = arith.constant 0 : i32
    %c0_i32_0 = arith.constant 0 : i32
    return %arg0, %c0_i32 : i32, i32
  }
}

</mosaic_0001>

<bundles_post_ra>
// kernel: polnet_forward.1
= control target key start
LH: loop header
LB: loop body
LE: loop exit
PB: predicated region body
PF: predicated region fallthrough
CT: control target
= control target key end

     0   :  { %16 = vsyncpa [#allocation4], 0  ;;  %s7087_s0 = inlined_call_operand.vmem [shape: f32[32,16,96], index: 0, kind: input, shape index: {}]   ;;  %s7088_s1 = inlined_call_operand.vmem [shape: bf16[5,96,256], index: 1, kind: input, shape index: {}]   ;;  %s7089_s2 = inlined_call_operand.vmem [shape: f32[1,256], index: 2, kind: input, shape index: {}]   ;;  %s7090_s3 = inlined_call_operand.vmem [shape: bf16[5,128,256], index: 3, kind: input, shape index: {}]   ;;  %s7091_s4 = inlined_call_operand.vmem [shape: f32[1,256], index: 4, kind: input, shape index: {}]   ;;  %s7092_s5 = inlined_call_operand.vmem [shape: bf16[5,128,128], index: 5, kind: input, shape index: {}]   ;;  %s7093_s6 = inlined_call_operand.vmem [shape: f32[1,128], index: 6, kind: input, shape index: {}]   ;;  %s7094_s7 = inlined_call_operand.vmem [shape: bf16[128,128], index: 7, kind: input, shape index: {}]   ;;  %s7095_s8 = inlined_call_operand.vmem [shape: f32[1,128], index: 8, kind: input, shape index: {}]   ;;  %s7096_s9 = inlined_call_operand.vmem [shape: bf16[128,128], index: 9, kind: input, shape index: {}]   ;;  %s7097_s10 = inlined_call_operand.vmem [shape: f32[1,128], index: 10, kind: input, shape index: {}]   ;;  %s7098_s11 = inlined_call_operand.hbm [shape: f32[16,128], index: 11, kind: output, shape index: {}]  }
   0x1   :  { %18 = vsyncpa [#allocation4 + $0x1], 0  ;;  %s5561_s17 = smov 0   ;;  %s5563_s18 = smov 0  }
   0x2   :  { %s5565_s19 = smov 0   ;;  %s5567_s20 = smov 0  }
   0x3 LB: > { %s4148_s21 = sadd.s32 4294967295, %s5495_s20   ;;  %s4149_s22 = sadd.s32 4294967294, %s5495_s20   ;;  %s5495_s20 = sphi %s5567_s20, %s7111_s20   ;;  %s5491_s19 = sphi %s5565_s19, %s7110_s19   ;;  %s5487_s18 = sphi %s5563_s18, %s7109_s18   ;;  %s5483_s17 = sphi %s5561_s17, %s7108_s17  }
   0x4   : > { %s5584_s23 = sadd.s32 1, %s5495_s20   ;;  %s31_s24 = sadd.s32 1, %s5491_s19 }
   0x5   : > { %s28_s25 = ssub.s32 %s5495_s20, %s5584_s23  ;;  %p38_p0 = scmp.ne.s32.totalorder %s5491_s19, %s5487_s18 }
   0x6   : > { %p29_p1 = scmp.eq.s32.totalorder %s28_s25, 0  ;;  %p39_p2 = scmp.eq.s32.totalorder %s5495_s20, 0 }
   0x7   : > { %p278_p3 = scmp.eq.s32.totalorder %s4148_s21, 1  ;;  %p283_p4 = scmp.ne.s32.totalorder %s5487_s18, %s5483_s17 }
   0x8   : > { %s5597_s26 = scalar_select %p29_p1, %s5491_s19, %s31_s24  }
   0x9   : > { %p40_p5 = por %p39_p2, %p38_p0  ;;  %p5599_p6 = por %p278_p3, %p38_p0 }
   0xa   : > { %p284_p7 = scmp.eq.s32.totalorder %s4149_s22, 1  ;;  %p4151_p9 = scmp.ge.s32.totalorder %s5495_s20, 2 }
   0xc   : > { %p5603_p8 = por %p284_p7, %p283_p4  ;;  %330 = sbr.rel (%p4151_p9) target bundleno = 39 (0x27), region = 56 }
  0x13   : > { %333 = sbr.rel (!%p40_p5) target bundleno = 39 (0x27), region = 60  ;;  %s335_s29 = sand.u32 (%p40_p5), 1, %s5491_s19  }
  0x14   : > { %s4153_s30 = sshll.u32 (%p40_p5), %s5495_s20, 3  ;;  %s4152_s12 = sshll.u32 (%p40_p5), %s335_s29, 8 }
  0x15   : > { %s5615_s15 = scalar_lea.vmem (%p40_p5), %s7087_s0, %s4153_s30  ;;  %s5620_s16 = scalar_lea.vmem (%p40_p5), [#allocation2], %s4152_s12 }
  0x16   : > { %v429_v0 = vld [vmem:[%s5615_s15] sm:$0xff] (%p40_p5)  ;;  %v431_v1 = vld [vmem:[%s5615_s15 + $0x10] sm:$0xff] (%p40_p5) }
  0x17   : > { %v433_v2 = vld [vmem:[%s5615_s15 + $0x20] sm:$0xff] (%p40_p5)  ;;  %430 = vst [vmem:[%s5620_s16] sm:$0xff] (%p40_p5), %v429_v0  ;;  %432 = vst [vmem:[%s5620_s16 + $0x8] sm:$0xff] (%p40_p5), %v431_v1  ;;  %v435_v3 = vld [vmem:[%s5615_s15 + $0x30] sm:$0xff] (%p40_p5) }
  0x18   : > { %434 = vst [vmem:[%s5620_s16 + $0x10] sm:$0xff] (%p40_p5), %v433_v2  ;;  %v437_v4 = vld [vmem:[%s5615_s15 + $0x40] sm:$0xff] (%p40_p5)  ;;  %v439_v5 = vld [vmem:[%s5615_s15 + $0x50] sm:$0xff] (%p40_p5)  ;;  %436 = vst [vmem:[%s5620_s16 + $0x18] sm:$0xff] (%p40_p5), %v435_v3 }
  0x19   : > { %438 = vst [vmem:[%s5620_s16 + $0x20] sm:$0xff] (%p40_p5), %v437_v4  ;;  %440 = vst [vmem:[%s5620_s16 + $0x28] sm:$0xff] (%p40_p5), %v439_v5  ;;  %v441_v6 = vld [vmem:[%s5615_s15 + $0x60] sm:$0xff] (%p40_p5)  ;;  %v443_v7 = vld [vmem:[%s5615_s15 + $0x70] sm:$0xff] (%p40_p5) }
  0x1a   : > { %v445_v8 = vld [vmem:[%s5615_s15 + $0x80] sm:$0xff]  ;;  %442 = vst [vmem:[%s5620_s16 + $0x30] sm:$0xff] %v441_v6  ;;  %444 = vst [vmem:[%s5620_s16 + $0x38] sm:$0xff] %v443_v7  ;;  %v447_v9 = vld [vmem:[%s5615_s15 + $0x90] sm:$0xff] }
  0x1b   : > { %446 = vst [vmem:[%s5620_s16 + $0x40] sm:$0xff] %v445_v8  ;;  %v449_v10 = vld [vmem:[%s5615_s15 + $0xa0] sm:$0xff]  ;;  %v451_v11 = vld [vmem:[%s5615_s15 + $0xb0] sm:$0xff]  ;;  %448 = vst [vmem:[%s5620_s16 + $0x48] sm:$0xff] %v447_v9 }
  0x1c   : > { %450 = vst [vmem:[%s5620_s16 + $0x50] sm:$0xff] %v449_v10  ;;  %452 = vst [vmem:[%s5620_s16 + $0x58] sm:$0xff] %v451_v11  ;;  %v453_v12 = vld [vmem:[%s5615_s15 + $0xc0] sm:$0xff]  ;;  %v455_v13 = vld [vmem:[%s5615_s15 + $0xd0] sm:$0xff] }
  0x1d   : > { %v457_v14 = vld [vmem:[%s5615_s15 + $0xe0] sm:$0xff]  ;;  %454 = vst [vmem:[%s5620_s16 + $0x60] sm:$0xff] %v453_v12  ;;  %456 = vst [vmem:[%s5620_s16 + $0x68] sm:$0xff] %v455_v13  ;;  %v459_v15 = vld [vmem:[%s5615_s15 + $0xf0] sm:$0xff] }
  0x1e   : > { %458 = vst [vmem:[%s5620_s16 + $0x70] sm:$0xff] %v457_v14  ;;  %v461_v16 = vld [vmem:[%s5615_s15 + $0x100] sm:$0xff]  ;;  %v463_v17 = vld [vmem:[%s5615_s15 + $0x110] sm:$0xff]  ;;  %460 = vst [vmem:[%s5620_s16 + $0x78] sm:$0xff] %v459_v15 }
  0x1f   : > { %462 = vst [vmem:[%s5620_s16 + $0x80] sm:$0xff] %v461_v16  ;;  %464 = vst [vmem:[%s5620_s16 + $0x88] sm:$0xff] %v463_v17  ;;  %v465_v18 = vld [vmem:[%s5615_s15 + $0x120] sm:$0xff]  ;;  %v467_v19 = vld [vmem:[%s5615_s15 + $0x130] sm:$0xff] }
  0x20   : > { %v469_v20 = vld [vmem:[%s5615_s15 + $0x140] sm:$0xff]  ;;  %466 = vst [vmem:[%s5620_s16 + $0x90] sm:$0xff] %v465_v18  ;;  %468 = vst [vmem:[%s5620_s16 + $0x98] sm:$0xff] %v467_v19  ;;  %v471_v21 = vld [vmem:[%s5615_s15 + $0x150] sm:$0xff] }
  0x21   : > { %470 = vst [vmem:[%s5620_s16 + $0xa0] sm:$0xff] %v469_v20  ;;  %v473_v22 = vld [vmem:[%s5615_s15 + $0x160] sm:$0xff]  ;;  %v475_v23 = vld [vmem:[%s5615_s15 + $0x170] sm:$0xff]  ;;  %472 = vst [vmem:[%s5620_s16 + $0xa8] sm:$0xff] %v471_v21 }
  0x22   : > { %474 = vst [vmem:[%s5620_s16 + $0xb0] sm:$0xff] %v473_v22  ;;  %476 = vst [vmem:[%s5620_s16 + $0xb8] sm:$0xff] %v475_v23  ;;  %v477_v24 = vld [vmem:[%s5615_s15 + $0x180] sm:$0xff]  ;;  %v479_v25 = vld [vmem:[%s5615_s15 + $0x190] sm:$0xff] }
  0x23   : > { %v481_v26 = vld [vmem:[%s5615_s15 + $0x1a0] sm:$0xff]  ;;  %478 = vst [vmem:[%s5620_s16 + $0xc0] sm:$0xff] %v477_v24  ;;  %480 = vst [vmem:[%s5620_s16 + $0xc8] sm:$0xff] %v479_v25  ;;  %v483_v27 = vld [vmem:[%s5615_s15 + $0x1b0] sm:$0xff] }
  0x24   : > { %482 = vst [vmem:[%s5620_s16 + $0xd0] sm:$0xff] %v481_v26  ;;  %v485_v28 = vld [vmem:[%s5615_s15 + $0x1c0] sm:$0xff]  ;;  %v487_v29 = vld [vmem:[%s5615_s15 + $0x1d0] sm:$0xff]  ;;  %484 = vst [vmem:[%s5620_s16 + $0xd8] sm:$0xff] %v483_v27 }
  0x25   : > { %486 = vst [vmem:[%s5620_s16 + $0xe0] sm:$0xff] %v485_v28  ;;  %488 = vst [vmem:[%s5620_s16 + $0xe8] sm:$0xff] %v487_v29  ;;  %v489_v30 = vld [vmem:[%s5615_s15 + $0x1e0] sm:$0xff]  ;;  %v491_v31 = vld [vmem:[%s5615_s15 + $0x1f0] sm:$0xff] }
  0x26   : > { %490 = vst [vmem:[%s5620_s16 + $0xf0] sm:$0xff] %v489_v30  ;;  %492 = vst [vmem:[%s5620_s16 + $0xf8] sm:$0xff] %v491_v31 }
  0x27 PF: > { %p4154_p10 = scmp.ge.s32.totalorder %s5495_s20, 1  ;;  %p497_p11 = scmp.lt.s32.totalorder %s5495_s20, 3 }
  0x29   : > { %p498_p12 = pnand %p4154_p10, %p497_p11 }
  0x2a   : > { %v5167_v32 = vld [vmem:[%s7088_s1 + $0x64] ss:$8 sps:$4 sm:$0xff] (!%p498_p12)   ;;  %v5169_v33 = vld [vmem:[%s7088_s1 + $0x60] ss:$8 sps:$4 sm:$0xff] (!%p498_p12)   ;;  %v7101_v34 = vmov (!%p498_p12), 0   ;;  %s5709_s30 = sand.u32 (!%p498_p12), 1, %s5487_s18  }
  0x2b   : > { %501 = sbr.rel (%p498_p12) target bundleno = 1898 (0x76a), region = 98  ;;  %764 = vmatprep.mubr.bf16.mxu0 (!%p498_p12), %v7101_v34  ;;  %804 = vmatprep.mubr.bf16.mxu1 (!%p498_p12), %v7101_v34  ;;  %v5170_v35 = vld [vmem:[%s7088_s1 + $0x74] ss:$8 sps:$4 sm:$0xff] (!%p498_p12)   ;;  %v5172_v36 = vld [vmem:[%s7088_s1 + $0x70] ss:$8 sps:$4 sm:$0xff] (!%p498_p12)   ;;  %s4155_s16 = sshll.u32 (!%p498_p12), %s5709_s30, 8 }
  0x2c   : > { %732 = vmatprep.subr.bf16.mxu0 (!%p498_p12), %v5167_v32  ;;  %4809 = vmatprep.subr.bf16.mxu1 (!%p498_p12), %v5167_v32  ;;  %v5173_v37 = vld [vmem:[%s7088_s1 + $0x84] ss:$8 sps:$4 sm:$0xff] (!%p498_p12)   ;;  %v5175_v38 = vld [vmem:[%s7088_s1 + $0x80] ss:$8 sps:$4 sm:$0xff] (!%p498_p12)   ;;  %v5176_v39 = vld [vmem:[%s7088_s1 + $0x94] ss:$8 sps:$4 sm:$0xff] (!%p498_p12)  }
  0x2d   : > { %733 = vmatpush1.bf16.msra.mxu0 (!%p498_p12), %v5169_v33  ;;  %4815 = vmatpush1.bf16.msra.mxu1 (!%p498_p12), %v5169_v33  ;;  %v5178_v40 = vld [vmem:[%s7088_s1 + $0x90] ss:$8 sps:$4 sm:$0xff] (!%p498_p12)   ;;  %v5179_v41 = vld [vmem:[%s7088_s1 + $0xa4] ss:$8 sps:$4 sm:$0xff] (!%p498_p12)   ;;  %v5181_v42 = vld [vmem:[%s7088_s1 + $0xa0] ss:$8 sps:$4 sm:$0xff] (!%p498_p12)  }
  0x2e   : > { %734 = vmatprep.subr.bf16.mxu0 (!%p498_p12), %v5170_v35  ;;  %4810 = vmatprep.subr.bf16.mxu1 (!%p498_p12), %v5170_v35  ;;  %v5182_v43 = vld [vmem:[%s7088_s1 + $0xb4] ss:$8 sps:$4 sm:$0xff] (!%p498_p12)   ;;  %v5184_v44 = vld [vmem:[%s7088_s1 + $0xb0] ss:$8 sps:$4 sm:$0xff] (!%p498_p12)   ;;  %s5727_s14 = scalar_lea.vmem (!%p498_p12), [#allocation2], %s4155_s16  ;;  %vm689_vm0 = vcmask (!%p498_p12), 785408  }
  0x2f   : > { %v545_v45 = vld [vmem:[%s5727_s14 + $0x8] sm:$0xff] (!%p498_p12)  ;;  %v546_v46 = vld [vmem:[%s5727_s14 + $0x10] sm:$0xff] (!%p498_p12)  ;;  %v547_v52 = vld [vmem:[%s5727_s14 + $0x18] sm:$0xff] (!%p498_p12)  ;;  %vm5499_vm1 = vmmov (!%p498_p12), 0   ;;  %s4156_s16 = sshll.u32 (!%p498_p12), %s5709_s30, 3  ;;  %s4603_s12 = sshll.u32 (!%p498_p12), %s4148_s21, 7 }
  0x30   : > { %v5187_v47 = vld [vmem:[%s7088_s1 + $0x4] ss:$8 sps:$4 sm:$0xff] (!%p498_p12)   ;;  %v602_v48 = vpack.c.bf16 (!%p498_p12), %v546_v46, %v545_v45  ;;  %v5185_v49 = vld [vmem:[%s7088_s1] ss:$8 sps:$4 sm:$0xff] (!%p498_p12)   ;;  %v5190_v50 = vld [vmem:[%s7088_s1 + $0x14] ss:$8 sps:$4 sm:$0xff] (!%p498_p12)   ;;  %v5811_v13 = vpack.c.bf16 (!%p498_p12), %v547_v52, %v546_v46  ;;  %s7043_s24 = scalar_lea.hbm (!%p498_p12), %s7098_s11, %s4603_s12 }
  0x31   : > { %735 = vmatpush1.bf16.msra.mxu0 (!%p498_p12), %v5172_v36  ;;  %4816 = vmatpush1.bf16.msra.mxu1 (!%p498_p12), %v5172_v36  ;;  %v5188_v51 = vld [vmem:[%s7088_s1 + $0x10] ss:$8 sps:$4 sm:$0xff] (!%p498_p12)   ;;  %v548_v53 = vld [vmem:[%s5727_s14 + $0x20] sm:$0xff] (!%p498_p12)  ;;  %v5196_v57 = vld [vmem:[%s7088_s1 + $0x34] ss:$8 sps:$4 sm:$0xff] (!%p498_p12)   ;;  %s542_s13 = scalar_lea.vmem (!%p498_p12), [#allocation3], %s4156_s16 }
  0x32   : > { %736 = vmatprep.subr.bf16.mxu0 %v5173_v37  ;;  %4811 = vmatprep.subr.bf16.mxu1 %v5173_v37  ;;  %v5193_v54 = vld [vmem:[%s7088_s1 + $0x24] ss:$8 sps:$4 sm:$0xff]   ;;  %v5750_v55 = vpack.c.bf16 %v548_v53, %v547_v52  ;;  %v5191_v56 = vld [vmem:[%s7088_s1 + $0x20] ss:$8 sps:$4 sm:$0xff]   ;;  %v550_v59 = vld [vmem:[%s5727_s14 + $0x30] sm:$0xff]  ;;  %s4084_s15 = sshll.u32 %s542_s13, 4  ;;  %s7045_s15 = int_to_ptr.vmem [resolvable:$true] %s4084_s15 }
  0x33   : > { %v549_v58 = vld [vmem:[%s5727_s14 + $0x28] sm:$0xff]  ;;  %v5194_v60 = vld [vmem:[%s7088_s1 + $0x30] ss:$8 sps:$4 sm:$0xff]   ;;  %v5202_v0 = vld [vmem:[%s7088_s1 + $0x54] ss:$8 sps:$4 sm:$0xff]   ;;  %s4071_s25 = scalar_lea.sflag [#allocation4], %s5709_s30 }
  0x34   : > { %v5199_v61 = vld [vmem:[%s7088_s1 + $0x44] ss:$8 sps:$4 sm:$0xff]   ;;  %v5197_v62 = vld [vmem:[%s7088_s1 + $0x40] ss:$8 sps:$4 sm:$0xff]   ;;  %v5772_v63 = vpack.c.bf16 %v550_v59, %v549_v58  ;;  %v551_v1 = vld [vmem:[%s5727_s14 + $0x38] sm:$0xff]  ;;  %v5828_v18 = vpack.c.bf16 %v549_v58, %v548_v53  ;;  %s5433_s21 = scalar_lea.vmem %s7045_s15, 128 }
  0x35   : > { %737 = vmatpush1.bf16.msra.mxu0 %v5175_v38  ;;  %4817 = vmatpush1.bf16.msra.mxu1 %v5175_v38  ;;  %v552_v2 = vld [vmem:[%s5727_s14 + $0x40] sm:$0xff]  ;;  %v5200_v3 = vld [vmem:[%s7088_s1 + $0x50] ss:$8 sps:$4 sm:$0xff]   ;;  %v5208_v9 = vld [vmem:[%s7088_s1 + $0xd4] ss:$8 sps:$4 sm:$0xff]   ;;  %v5842_v22 = vpack.c.bf16 %v551_v1, %v550_v59  ;;  %p5434_p13 = scmp.ne.s32.totalorder %s7045_s15, %s5433_s21  ;;  %s5500_s16 = smov [#allocation3]  }
  0x36   : > { %738 = vmatprep.subr.bf16.mxu0 %v5176_v39  ;;  %4812 = vmatprep.subr.bf16.mxu1 %v5176_v39  ;;  %v5205_v4 = vld [vmem:[%s7088_s1 + $0xc4] ss:$8 sps:$4 sm:$0xff]   ;;  %v5788_v5 = vpack.c.bf16 %v552_v2, %v551_v1  ;;  %v5203_v7 = vld [vmem:[%s7088_s1 + $0xc0] ss:$8 sps:$4 sm:$0xff]   ;;  %v5206_v10 = vld [vmem:[%s7088_s1 + $0xd0] ss:$8 sps:$4 sm:$0xff]  }
  0x37   : > { %v544_v6 = vld [vmem:[%s5727_s14] sm:$0xff]  ;;  %v5214_v14 = vld [vmem:[%s7088_s1 + $0xf4] ss:$8 sps:$4 sm:$0xff]   ;;  %v5212_v15 = vld [vmem:[%s7088_s1 + $0xf0] ss:$8 sps:$4 sm:$0xff]   ;;  %p5435_p0 = pnand %p5434_p13, %p5599_p6  ;;  %s5437_s29 = sshll.u32 %s5500_s16, 4  ;;  %s5438_s29 = int_to_ptr.vmem [resolvable:$false] %s5437_s29 }
  0x38   : > { %v576_v8 = vpack.c.bf16 %v545_v45, %v544_v6  ;;  %v5211_v11 = vld [vmem:[%s7088_s1 + $0xe4] ss:$8 sps:$4 sm:$0xff]   ;;  %v5209_v12 = vld [vmem:[%s7088_s1 + $0xe0] ss:$8 sps:$4 sm:$0xff]   ;;  %v5220_v19 = vld [vmem:[%s7088_s1 + $0x114] ss:$8 sps:$4 sm:$0xff]   ;;  %p5440_p2 = scmp.lt.s32.totalorder %s7045_s15, %s5438_s29 }
  0x39   : > { %739 = vmatpush1.bf16.msra.mxu0 %v5178_v40  ;;  %4818 = vmatpush1.bf16.msra.mxu1 %v5178_v40  ;;  %v5217_v16 = vld [vmem:[%s7088_s1 + $0x104] ss:$8 sps:$4 sm:$0xff]   ;;  %v5215_v17 = vld [vmem:[%s7088_s1 + $0x100] ss:$8 sps:$4 sm:$0xff]   ;;  %v5218_v20 = vld [vmem:[%s7088_s1 + $0x110] ss:$8 sps:$4 sm:$0xff]   ;;  %p5436_p1 = pneg %p5435_p0 }
  0x3a   : > { %740 = vmatprep.subr.bf16.mxu0 %v5179_v41  ;;  %4813 = vmatprep.subr.bf16.mxu1 %v5179_v41  ;;  %v5223_v21 = vld [vmem:[%s7088_s1 + $0x124] ss:$8 sps:$4 sm:$0xff]   ;;  %v554_v25 = vld [vmem:[%s5727_s14 + $0x50] sm:$0xff]  ;;  %v5852_v26 = vld [vmem:[%s5727_s14 + $0x58] sm:$0xff]  ;;  %s5439_s22 = scalar_lea.vmem %s5438_s29, 256 }
  0x3b   : > { %v553_v23 = vld [vmem:[%s5727_s14 + $0x48] sm:$0xff]  ;;  %v5858_v27 = vpack.c.bf16 %v5852_v26, %v554_v25  ;;  %v556_v28 = vld [vmem:[%s5727_s14 + $0x60] sm:$0xff]  ;;  %v5871_v31 = vld [vmem:[%s5727_s14 + $0x70] sm:$0xff]  ;;  %p5441_p3 = scmp.lt.s32.totalorder %s5439_s22, %s5433_s21 }
  0x3c   : > { %v5848_v24 = vpack.c.bf16 %v553_v23, %v552_v2  ;;  %v5864_v29 = vld [vmem:[%s5727_s14 + $0x68] sm:$0xff]  ;;  %v5874_v32 = vld [vmem:[%s5727_s14 + $0x78] sm:$0xff]  ;;  %v5887_v35 = vld [vmem:[%s5727_s14 + $0x80] sm:$0xff] }
  0x3d   : > { %741 = vmatpush1.bf16.msra.mxu0 %v5181_v42  ;;  %4819 = vmatpush1.bf16.msra.mxu1 %v5181_v42  ;;  %v5868_v30 = vpack.c.bf16 %v5864_v29, %v556_v28  ;;  %v5881_v33 = vpack.c.bf16 %v5874_v32, %v5871_v31  ;;  %v5890_v36 = vld [vmem:[%s5727_s14 + $0x88] sm:$0xff]  ;;  %v5900_v38 = vld [vmem:[%s5727_s14 + $0x90] sm:$0xff]  ;;  %v5903_v39 = vld [vmem:[%s5727_s14 + $0x98] sm:$0xff]  ;;  %p5442_p4 = por %p5441_p3, %p5440_p2 }
  0x3e   : > { %742 = vmatprep.subr.bf16.mxu0 %v5182_v43  ;;  %4814 = vmatprep.subr.bf16.mxu1 %v5182_v43  ;;  %v5894_v37 = vpack.c.bf16 %v5890_v36, %v5887_v35  ;;  %v5907_v40 = vpack.c.bf16 %v5903_v39, %v5900_v38  ;;  %v5913_v41 = vld [vmem:[%s5727_s14 + $0xa0] sm:$0xff]  ;;  %v5916_v42 = vld [vmem:[%s5727_s14 + $0xa8] sm:$0xff]  ;;  %v5929_v45 = vld [vmem:[%s5727_s14 + $0xb8] sm:$0xff] }
  0x3f   : > { %v5920_v43 = vpack.c.bf16 %v5916_v42, %v5913_v41  ;;  %v5221_v53 = vld [vmem:[%s7088_s1 + $0x120] ss:$8 sps:$4 sm:$0xff]   ;;  %v5229_v58 = vld [vmem:[%s7088_s1 + $0x144] ss:$8 sps:$4 sm:$0xff]   ;;  %v5238_v2 = vld [vmem:[%s7088_s1 + $0x174] ss:$8 sps:$4 sm:$0xff]   ;;  %p5443_p5 = pnand %p5442_p4, %p5436_p1 }
  0x40   : > { %v5227_v59 = vld [vmem:[%s7088_s1 + $0x140] ss:$8 sps:$4 sm:$0xff]   ;;  %v5241_v6 = vld [vmem:[%s7088_s1 + $0x184] ss:$8 sps:$4 sm:$0xff]  }
  0x41   : > { %743 = vmatpush1.bf16.msra.mxu0 %v5184_v44  ;;  %4820 = vmatpush1.bf16.msra.mxu1 %v5184_v44  ;;  %v5926_v44 = vld [vmem:[%s5727_s14 + $0xb0] sm:$0xff]  ;;  %v5233_v1 = vld [vmem:[%s7088_s1 + $0x160] ss:$8 sps:$4 sm:$0xff]  }
  0x42   : > { %1007 = vmatprep.subr.bf16.mxu0 %v5187_v47  ;;  %v5933_v46 = vpack.c.bf16 %v5929_v45, %v5926_v44  ;;  %v5939_v47 = vld [vmem:[%s5727_s14 + $0xc0] sm:$0xff] }
  0x44   : > { %4181 = vmatmul.mubr.msk.bf16.vlgmr.msra.gmra.mrb[0].mxu0 %vm689_vm0, %v602_v48  ;;  %v5942_v48 = vld [vmem:[%s5727_s14 + $0xc8] sm:$0xff] }
  0x45   : > { %1008 = vmatpush1.bf16.msra.mxu0 %v5185_v49  ;;  %774 = vmatprep.mubr.bf16.mxu0 %v7101_v34  ;;  %v5946_v49 = vpack.c.bf16 %v5942_v48, %v5939_v47 }
  0x46   : > { %1009 = vmatprep.subr.bf16.mxu0 %v5190_v50  ;;  %v5952_v50 = vld [vmem:[%s5727_s14 + $0xd0] sm:$0xff] }
  0x49   : > { %1010 = vmatpush1.bf16.msra.mxu0 %v5188_v51  ;;  %v5955_v51 = vld [vmem:[%s5727_s14 + $0xd8] sm:$0xff] }
  0x4a   : > { %1011 = vmatprep.subr.bf16.mxu0 %v5193_v54  ;;  %v5959_v52 = vpack.c.bf16 %v5955_v51, %v5952_v50  ;;  %v5226_v54 = vld [vmem:[%s7088_s1 + $0x134] ss:$8 sps:$4 sm:$0xff]  }
  0x4c   : > { %4182 = vmatmul.mubr.msk.bf16.gmra.mrb[4].mxu0 %vm689_vm0, %v5750_v55 }
  0x4d   : > { %1012 = vmatpush1.bf16.msra.mxu0 %v5191_v56  ;;  %784 = vmatprep.mubr.bf16.mxu0 %v7101_v34  ;;  %v5224_v56 = vld [vmem:[%s7088_s1 + $0x130] ss:$8 sps:$4 sm:$0xff]  }
  0x4e   : > { %1013 = vmatprep.subr.bf16.mxu0 %v5196_v57  ;;  %v5976_v57 = vpack.c.bf16 %v554_v25, %v553_v23  ;;  %v5245_v23 = vld [vmem:[%s7088_s1 + $0x1a0] ss:$8 sps:$4 sm:$0xff]   ;;  %v5248_v25 = vld [vmem:[%s7088_s1 + $0x1b0] ss:$8 sps:$4 sm:$0xff]  }
  0x50   : > { %4185 = vmatmul.mubr.msk.bf16.vlgmr.msra.gmra.mrb[0].mxu1 %vm689_vm0, %v5976_v57 }
  0x51   : > { %1014 = vmatpush1.bf16.msra.mxu0 %v5194_v60  ;;  %814 = vmatprep.mubr.bf16.mxu1 %v7101_v34  ;;  %v5232_v60 = vld [vmem:[%s7088_s1 + $0x154] ss:$8 sps:$4 sm:$0xff]  }
  0x52   : > { %1015 = vmatprep.subr.bf16.mxu0 %v5199_v61  ;;  %v5230_v61 = vld [vmem:[%s7088_s1 + $0x150] ss:$8 sps:$4 sm:$0xff]  }
  0x54   : > { %4183 = vmatmul.mubr.msk.bf16.gmra.mrb[8].mxu0 %vm689_vm0, %v5772_v63 }
  0x55   : > { %794 = vmatprep.mubr.bf16.mxu0 %v7101_v34  ;;  %1016 = vmatpush1.bf16.msra.mxu0 %v5197_v62  ;;  %v5997_v62 = vpack.c.bf16 %v556_v28, %v5852_v26  ;;  %v5253_v26 = vld [vmem:[%s7088_s1 + $0x1c4] ss:$8 sps:$4 sm:$0xff]   ;;  %v5251_v28 = vld [vmem:[%s7088_s1 + $0x1c0] ss:$8 sps:$4 sm:$0xff]  }
  0x56   : > { %1017 = vmatprep.subr.bf16.mxu0 %v5202_v0  ;;  %v5235_v0 = vld [vmem:[%s7088_s1 + $0x164] ss:$8 sps:$4 sm:$0xff]  }
  0x58   : > { %4186 = vmatmul.mubr.msk.bf16.gmra.mrb[4].mxu1 %vm689_vm0, %v5997_v62 }
  0x59   : > { %1018 = vmatpush1.bf16.msra.mxu0 %v5200_v3  ;;  %824 = vmatprep.mubr.bf16.mxu1 %v7101_v34  ;;  %v5236_v3 = vld [vmem:[%s7088_s1 + $0x170] ss:$8 sps:$4 sm:$0xff]  }
  0x5a   : > { %1257 = vmatprep.subr.bf16.mxu0 %v5205_v4  ;;  %v6019_v4 = vpack.c.bf16 %v5871_v31, %v5864_v29  ;;  %v5254_v29 = vld [vmem:[%s7088_s1 + $0x1d0] ss:$8 sps:$4 sm:$0xff]   ;;  %v5259_v31 = vld [vmem:[%s7090_s3 + $0x84] ss:$8 sps:$4 sm:$0xff]  }
  0x5b   : > { %2387 = vmatprep.subr.bf16.mxu1 %v5259_v31  ;;  %v2098_v31 = vld [vmem:[%s7089_s2] sm:$0x3] }
  0x5c   : > { %4184 = vmatmul.mubr.msk.bf16.gmra.mrb[12].mxu0 %vm689_vm0, %v5788_v5 }
  0x5d   : > { %1039 = vmatprep.mubr.bf16.mxu0 %v7101_v34 }
  0x60   : > { %4187 = vmatmul.mubr.msk.bf16.gmra.mrb[8].mxu1 %vm689_vm0, %v6019_v4 }
  0x61   : > { %834 = vmatprep.mubr.bf16.mxu1 %v7101_v34 }
  0x64   : > { %4207 = vmatmul.mubr.msk.bf16.vlgmr.msra.gmra.mrb[0].mxu0 %vm689_vm0, %v576_v8  ;;  %v6042_v8 = vpack.c.bf16 %v5900_v38, %v5890_v36  ;;  %v574_v36 = vld [vmem:[%s5727_s14 + $0xf0] sm:$0xff] }
  0x65   : > { %1258 = vmatpush1.bf16.msra.mxu0 %v5203_v7  ;;  %1049 = vmatprep.mubr.bf16.mxu0 %v7101_v34  ;;  %v6032_v7 = vpack.c.bf16 %v5887_v35, %v5874_v32  ;;  %v5262_v32 = vld [vmem:[%s7090_s3 + $0x94] ss:$8 sps:$4 sm:$0xff]   ;;  %v5260_v35 = vld [vmem:[%s7090_s3 + $0x90] ss:$8 sps:$4 sm:$0xff]  }
  0x66   : > { %1259 = vmatprep.subr.bf16.mxu0 %v5208_v9  ;;  %v6052_v9 = vpack.c.bf16 %v5913_v41, %v5903_v39  ;;  %v5274_v39 = vld [vmem:[%s7090_s3 + $0xd4] ss:$8 sps:$4 sm:$0xff]   ;;  %v5272_v41 = vld [vmem:[%s7090_s3 + $0xd0] ss:$8 sps:$4 sm:$0xff]  }
  0x68   : > { %4188 = vmatmul.mubr.msk.bf16.gmra.mrb[12].mxu1 %vm689_vm0, %v6032_v7 }
  0x69   : > { %1260 = vmatpush1.bf16.msra.mxu0 %v5206_v10  ;;  %844 = vmatprep.mubr.bf16.mxu1 %v7101_v34  ;;  %v6062_v10 = vpack.c.bf16 %v5926_v44, %v5916_v42  ;;  %v5277_v42 = vld [vmem:[%s7090_s3 + $0xe4] ss:$8 sps:$4 sm:$0xff]   ;;  %v5280_v44 = vld [vmem:[%s7090_s3 + $0xf4] ss:$8 sps:$4 sm:$0xff]  }
  0x6a   : > { %1261 = vmatprep.subr.bf16.mxu0 %v5211_v11  ;;  %v6072_v11 = vpack.c.bf16 %v5939_v47, %v5929_v45  ;;  %v5278_v45 = vld [vmem:[%s7090_s3 + $0xf0] ss:$8 sps:$4 sm:$0xff]  }
  0x6c   : > { %4208 = vmatmul.mubr.msk.bf16.gmra.mrb[4].mxu0 %vm689_vm0, %v5811_v13 }
  0x6d   : > { %1059 = vmatprep.mubr.bf16.mxu0 %v7101_v34  ;;  %1262 = vmatpush1.bf16.msra.mxu0 %v5209_v12  ;;  %v6082_v12 = vpack.c.bf16 %v5952_v50, %v5942_v48 }
  0x6e   : > { %1263 = vmatprep.subr.bf16.mxu0 %v5214_v14 }
  0x70   : > { %4189 = vmatmul.mubr.msk.bf16.gmra.mrb[16].mxu1 %vm689_vm0, %v6042_v8 }
  0x71   : > { %1264 = vmatpush1.bf16.msra.mxu0 %v5212_v15  ;;  %854 = vmatprep.mubr.bf16.mxu1 %v7101_v34  ;;  %v6107_v15 = vld [vmem:[%s5727_s14 + $0xe8] sm:$0xff] }
  0x72   : > { %1265 = vmatprep.subr.bf16.mxu0 %v5217_v16  ;;  %v1486_v38 = vpack.c.bf16 %v574_v36, %v6107_v15 }
  0x74   : > { %4209 = vmatmul.mubr.msk.bf16.gmra.mrb[8].mxu0 %vm689_vm0, %v5828_v18 }
  0x75   : > { %1069 = vmatprep.mubr.bf16.mxu0 %v7101_v34  ;;  %1266 = vmatpush1.bf16.msra.mxu0 %v5215_v17  ;;  %v5239_v17 = vld [vmem:[%s7088_s1 + $0x180] ss:$8 sps:$4 sm:$0xff]  }
  0x76   : > { %1267 = vmatprep.subr.bf16.mxu0 %v5220_v19  ;;  %v5244_v19 = vld [vmem:[%s7088_s1 + $0x194] ss:$8 sps:$4 sm:$0xff]  }
  0x78   : > { %4190 = vmatmul.mubr.msk.bf16.gmra.mrb[20].mxu1 %vm689_vm0, %v6052_v9 }
  0x79   : > { %1268 = vmatpush1.bf16.msra.mxu0 %v5218_v20  ;;  %864 = vmatprep.mubr.bf16.mxu1 %v7101_v34  ;;  %v5242_v20 = vld [vmem:[%s7088_s1 + $0x190] ss:$8 sps:$4 sm:$0xff]  }
  0x7a   : > { %1563 = vmatprep.subr.bf16.mxu0 %v5223_v21  ;;  %v5247_v21 = vld [vmem:[%s7088_s1 + $0x1a4] ss:$8 sps:$4 sm:$0xff]  }
  0x7c   : > { %4210 = vmatmul.mubr.msk.bf16.gmra.mrb[12].mxu0 %vm689_vm0, %v5842_v22 }
  0x7d   : > { %1079 = vmatprep.mubr.bf16.mxu0 %v7101_v34 }
  0x80   : > { %4191 = vmatmul.mubr.msk.bf16.gmra.mrb[24].mxu1 %vm689_vm0, %v6062_v10 }
  0x81   : > { %874 = vmatprep.mubr.bf16.mxu1 %v7101_v34 }
  0x84   : > { %4211 = vmatmul.mubr.msk.bf16.gmra.mrb[16].mxu0 %vm689_vm0, %v5848_v24 }
  0x85   : > { %1089 = vmatprep.mubr.bf16.mxu0 %v7101_v34 }
  0x88   : > { %4192 = vmatmul.mubr.msk.bf16.gmra.mrb[28].mxu1 %vm689_vm0, %v6072_v11 }
  0x89   : > { %884 = vmatprep.mubr.bf16.mxu1 %v7101_v34 }
  0x8c   : > { %4212 = vmatmul.mubr.msk.bf16.gmra.mrb[20].mxu0 %vm689_vm0, %v5858_v27 }
  0x8d   : > { %1099 = vmatprep.mubr.bf16.mxu0 %v7101_v34 }
  0x90   : > { %4193 = vmatmul.mubr.msk.bf16.gmra.mrb[32].mxu1 %vm689_vm0, %v6082_v12 }
  0x91   : > { %894 = vmatprep.mubr.bf16.mxu1 %v7101_v34 }
  0x94   : > { %4213 = vmatmul.mubr.msk.bf16.gmra.mrb[24].mxu0 %vm689_vm0, %v5868_v30 }
  0x95   : > { %1109 = vmatprep.mubr.bf16.mxu0 %v7101_v34 }
  0x9c   : > { %4214 = vmatmul.mubr.msk.bf16.gmra.mrb[28].mxu0 %vm689_vm0, %v5881_v33 }
  0x9d   : > { %1119 = vmatprep.mubr.bf16.mxu0 %v7101_v34 }
  0xa4   : > { %4215 = vmatmul.mubr.msk.bf16.gmra.mrb[32].mxu0 %vm689_vm0, %v5894_v37 }
  0xa5   : > { %1129 = vmatprep.mubr.bf16.mxu0 %v7101_v34 }
  0xac   : > { %4216 = vmatmul.mubr.msk.bf16.gmra.mrb[36].mxu0 %vm689_vm0, %v5907_v40 }
  0xad   : > { %1139 = vmatprep.mubr.bf16.mxu0 %v7101_v34 }
  0xb4   : > { %4217 = vmatmul.mubr.msk.bf16.gmra.mrb[40].mxu0 %vm689_vm0, %v5920_v43 }
  0xb5   : > { %1149 = vmatprep.mubr.bf16.mxu0 %v7101_v34 }
  0xbc   : > { %4218 = vmatmul.mubr.msk.bf16.gmra.mrb[44].mxu0 %vm689_vm0, %v5933_v46 }
  0xbd   : > { %1159 = vmatprep.mubr.bf16.mxu0 %v7101_v34 }
  0xc4   : > { %4219 = vmatmul.mubr.msk.bf16.gmra.mrb[48].mxu0 %vm689_vm0, %v5946_v49 }
  0xc5   : > { %1169 = vmatprep.mubr.bf16.mxu0 %v7101_v34 }
  0xcc   : > { %4220 = vmatmul.mubr.msk.bf16.gmra.mrb[52].mxu0 %vm689_vm0, %v5959_v52 }
  0xcd   : > { %1289 = vmatprep.mubr.bf16.mxu0 %v7101_v34 }
  0xd4   : > { %4245 = vmatmul.mubr.msk.bf16.vlgmr.msra.gmra.mrb[0].mxu0 %vm689_vm0, %v5811_v13  ;;  %v572_v13 = vld [vmem:[%s5727_s14 + $0xe0] sm:$0xff] }
  0xd5   : > { %1564 = vmatpush1.bf16.msra.mxu0 %v5221_v53  ;;  %1299 = vmatprep.mubr.bf16.mxu0 %v7101_v34  ;;  %v6092_v14 = vpack.c.bf16 %v572_v13, %v5955_v51  ;;  %v6110_v16 = vpack.c.bf16 %v6107_v15, %v572_v13 }
  0xd6   : > { %1565 = vmatprep.subr.bf16.mxu0 %v5226_v54 }
  0xd7   : > { %4194 = vmatmul.mubr.msk.bf16.gmra.mrb[36].mxu1 %vm689_vm0, %v6092_v14 }
  0xd8   : > { %2419 = vmatprep.mubr.bf16.mxu1 %v7101_v34 }
  0xd9   : > { %1566 = vmatpush1.bf16.msra.mxu0 %v5224_v56 }
  0xda   : > { %1567 = vmatprep.subr.bf16.mxu0 %v5229_v58 }
  0xdc   : > { %4246 = vmatmul.mubr.msk.bf16.gmra.mrb[4].mxu0 %vm689_vm0, %v5828_v18 }
  0xdd   : > { %1309 = vmatprep.mubr.bf16.mxu0 %v7101_v34  ;;  %1568 = vmatpush1.bf16.msra.mxu0 %v5227_v59 }
  0xde   : > { %1569 = vmatprep.subr.bf16.mxu0 %v5232_v60 }
  0xe1   : > { %1570 = vmatpush1.bf16.msra.mxu0 %v5230_v61 }
  0xe2   : > { %1571 = vmatprep.subr.bf16.mxu0 %v5235_v0 }
  0xe4   : > { %4247 = vmatmul.mubr.msk.bf16.gmra.mrb[8].mxu0 %vm689_vm0, %v5842_v22 }
  0xe5   : > { %1319 = vmatprep.mubr.bf16.mxu0 %v7101_v34  ;;  %1572 = vmatpush1.bf16.msra.mxu0 %v5233_v1 }
  0xe6   : > { %1573 = vmatprep.subr.bf16.mxu0 %v5238_v2 }
  0xe9   : > { %1574 = vmatpush1.bf16.msra.mxu0 %v5236_v3 }
  0xea   : > { %1869 = vmatprep.subr.bf16.mxu0 %v5241_v6 }
  0xec   : > { %4248 = vmatmul.mubr.msk.bf16.gmra.mrb[12].mxu0 %vm689_vm0, %v5848_v24 }
  0xed   : > { %1329 = vmatprep.mubr.bf16.mxu0 %v7101_v34 }
  0xf4   : > { %4249 = vmatmul.mubr.msk.bf16.gmra.mrb[16].mxu0 %vm689_vm0, %v5858_v27 }
  0xf5   : > { %1339 = vmatprep.mubr.bf16.mxu0 %v7101_v34 }
  0xfc   : > { %4250 = vmatmul.mubr.msk.bf16.gmra.mrb[20].mxu0 %vm689_vm0, %v5868_v30 }
  0xfd   : > { %1349 = vmatprep.mubr.bf16.mxu0 %v7101_v34 }
 0x104   : > { %4251 = vmatmul.mubr.msk.bf16.gmra.mrb[24].mxu0 %vm689_vm0, %v5881_v33 }
 0x105   : > { %1359 = vmatprep.mubr.bf16.mxu0 %v7101_v34 }
 0x10c   : > { %4252 = vmatmul.mubr.msk.bf16.gmra.mrb[28].mxu0 %vm689_vm0, %v5894_v37 }
 0x10d   : > { %1369 = vmatprep.mubr.bf16.mxu0 %v7101_v34 }
 0x114   : > { %4253 = vmatmul.mubr.msk.bf16.gmra.mrb[32].mxu0 %vm689_vm0, %v5907_v40 }
 0x115   : > { %1379 = vmatprep.mubr.bf16.mxu0 %v7101_v34 }
 0x11c   : > { %4254 = vmatmul.mubr.msk.bf16.gmra.mrb[36].mxu0 %vm689_vm0, %v5920_v43 }
 0x11d   : > { %1389 = vmatprep.mubr.bf16.mxu0 %v7101_v34 }
 0x124   : > { %4255 = vmatmul.mubr.msk.bf16.gmra.mrb[40].mxu0 %vm689_vm0, %v5933_v46 }
 0x125   : > { %1399 = vmatprep.mubr.bf16.mxu0 %v7101_v34 }
 0x12c   : > { %4256 = vmatmul.mubr.msk.bf16.gmra.mrb[44].mxu0 %vm689_vm0, %v5946_v49 }
 0x12d   : > { %1409 = vmatprep.mubr.bf16.mxu0 %v7101_v34 }
 0x134   : > { %4257 = vmatmul.mubr.msk.bf16.gmra.mrb[48].mxu0 %vm689_vm0, %v5959_v52 }
 0x135   : > { %1419 = vmatprep.mubr.bf16.mxu0 %v7101_v34 }
 0x13c   : > { %4258 = vmatmul.mubr.msk.bf16.gmra.mrb[52].mxu0 %vm689_vm0, %v6110_v16 }
 0x13d   : > { %1595 = vmatprep.mubr.bf16.mxu0 %v7101_v34 }
 0x144   : > { %4283 = vmatmul.mubr.msk.bf16.vlgmr.msra.gmra.mrb[0].mxu0 %vm689_vm0, %v5750_v55  ;;  %v5250_v55 = vld [vmem:[%s7088_s1 + $0x1b4] ss:$8 sps:$4 sm:$0xff]  }
 0x145   : > { %1870 = vmatpush1.bf16.msra.mxu0 %v5239_v17  ;;  %1605 = vmatprep.mubr.bf16.mxu0 %v7101_v34 }
 0x146   : > { %1871 = vmatprep.subr.bf16.mxu0 %v5244_v19 }
 0x149   : > { %1872 = vmatpush1.bf16.msra.mxu0 %v5242_v20 }
 0x14a   : > { %1873 = vmatprep.subr.bf16.mxu0 %v5247_v21 }
 0x14c   : > { %4284 = vmatmul.mubr.msk.bf16.gmra.mrb[4].mxu0 %vm689_vm0, %v5772_v63  ;;  %v5256_v63 = vld [vmem:[%s7088_s1 + $0x1d4] ss:$8 sps:$4 sm:$0xff]  }
 0x14d   : > { %1615 = vmatprep.mubr.bf16.mxu0 %v7101_v34  ;;  %1874 = vmatpush1.bf16.msra.mxu0 %v5245_v23 }
 0x14e   : > { %1875 = vmatprep.subr.bf16.mxu0 %v5250_v55 }
 0x151   : > { %1876 = vmatpush1.bf16.msra.mxu0 %v5248_v25 }
 0x152   : > { %1877 = vmatprep.subr.bf16.mxu0 %v5253_v26 }
 0x154   : > { %4285 = vmatmul.mubr.msk.bf16.gmra.mrb[8].mxu0 %vm689_vm0, %v5788_v5  ;;  %v5257_v5 = vld [vmem:[%s7090_s3 + $0x80] ss:$8 sps:$4 sm:$0xff]  }
 0x155   : > { %1625 = vmatprep.mubr.bf16.mxu0 %v7101_v34  ;;  %1878 = vmatpush1.bf16.msra.mxu0 %v5251_v28 }
 0x156   : > { %1879 = vmatprep.subr.bf16.mxu0 %v5256_v63  ;;  %2388 = vmatpush1.bf16.msra.mxu1 %v5257_v5  ;;  %v2100_v63 = vlaneseq }
 0x157   : > { %2389 = vmatprep.subr.bf16.mxu1 %v5262_v32 }
 0x159   : > { %1880 = vmatpush1.bf16.msra.mxu0 %v5254_v29  ;;  %v6363_v29 = vshrl.u32 %v2100_v63, 7 }
 0x15a   : > { %2390 = vmatpush1.bf16.msra.mxu1 %v5260_v35 }
 0x15b   : > { %v7100_v5 = vsub.s32 0, %v6363_v29  ;;  %v7099_v32 = vsub.s32 1, %v6363_v29 }
 0x15c   : > { %4286 = vmatmul.mubr.msk.bf16.gmra.mrb[12].mxu0 %vm689_vm0, %v5976_v57 }
 0x15d   : > { %1635 = vmatprep.mubr.bf16.mxu0 %v7101_v34  ;;  %v6372_v35 = vrot.slane %v2098_v31, %v7100_v5 }
 0x164   : > { %4287 = vmatmul.mubr.msk.bf16.gmra.mrb[16].mxu0 %vm689_vm0, %v5997_v62 }
 0x165   : > { %1645 = vmatprep.mubr.bf16.mxu0 %v7101_v34 }
 0x16c   : > { %4288 = vmatmul.mubr.msk.bf16.gmra.mrb[20].mxu0 %vm689_vm0, %v6019_v4  ;;  %v5283_v4 = vld [vmem:[%s7090_s3 + $0x4] ss:$8 sps:$4 sm:$0xff]  }
 0x16d   : > { %1655 = vmatprep.mubr.bf16.mxu0 %v7101_v34 }
 0x174   : > { %4289 = vmatmul.mubr.msk.bf16.gmra.mrb[24].mxu0 %vm689_vm0, %v6032_v7 }
 0x175   : > { %1665 = vmatprep.mubr.bf16.mxu0 %v7101_v34 }
 0x17c   : > { %4290 = vmatmul.mubr.msk.bf16.gmra.mrb[28].mxu0 %vm689_vm0, %v6042_v8 }
 0x17d   : > { %1675 = vmatprep.mubr.bf16.mxu0 %v7101_v34 }
 0x184   : > { %4291 = vmatmul.mubr.msk.bf16.gmra.mrb[32].mxu0 %vm689_vm0, %v6052_v9 }
 0x185   : > { %1685 = vmatprep.mubr.bf16.mxu0 %v7101_v34 }
 0x18c   : > { %4292 = vmatmul.mubr.msk.bf16.gmra.mrb[36].mxu0 %vm689_vm0, %v6062_v10 }
 0x18d   : > { %1695 = vmatprep.mubr.bf16.mxu0 %v7101_v34 }
 0x194   : > { %4293 = vmatmul.mubr.msk.bf16.gmra.mrb[40].mxu0 %vm689_vm0, %v6072_v11 }
 0x195   : > { %1705 = vmatprep.mubr.bf16.mxu0 %v7101_v34 }
 0x19c   : > { %4294 = vmatmul.mubr.msk.bf16.gmra.mrb[44].mxu0 %vm689_vm0, %v6082_v12 }
 0x19d   : > { %1715 = vmatprep.mubr.bf16.mxu0 %v7101_v34 }
 0x1a4   : > { %4295 = vmatmul.mubr.msk.bf16.gmra.mrb[48].mxu0 %vm689_vm0, %v6092_v14 }
 0x1a5   : > { %1725 = vmatprep.mubr.bf16.mxu0 %v7101_v34 }
 0x1ac   : > { %4296 = vmatmul.mubr.msk.bf16.gmra.mrb[52].mxu0 %vm689_vm0, %v1486_v38 }
 0x1ad   : > { %1901 = vmatprep.mubr.bf16.mxu0 %v7101_v34 }
 0x1b4   : > { %4321 = vmatmul.mubr.msk.bf16.vlgmr.msra.gmra.mrb[0].mxu0 %vm689_vm0, %v5828_v18  ;;  %v5265_v18 = vld [vmem:[%s7090_s3 + $0xa4] ss:$8 sps:$4 sm:$0xff]  }
 0x1b5   : > { %1911 = vmatprep.mubr.bf16.mxu0 %v7101_v34  ;;  %2391 = vmatprep.subr.bf16.mxu1 %v5265_v18 }
 0x1bc   : > { %4322 = vmatmul.mubr.msk.bf16.gmra.mrb[4].mxu0 %vm689_vm0, %v5842_v22  ;;  %v5263_v22 = vld [vmem:[%s7090_s3 + $0xa0] ss:$8 sps:$4 sm:$0xff]  }
 0x1bd   : > { %1921 = vmatprep.mubr.bf16.mxu0 %v7101_v34  ;;  %2392 = vmatpush1.bf16.msra.mxu1 %v5263_v22 }
 0x1c4   : > { %4323 = vmatmul.mubr.msk.bf16.gmra.mrb[8].mxu0 %vm689_vm0, %v5848_v24  ;;  %v5268_v24 = vld [vmem:[%s7090_s3 + $0xb4] ss:$8 sps:$4 sm:$0xff]  }
 0x1c5   : > { %1931 = vmatprep.mubr.bf16.mxu0 %v7101_v34  ;;  %2393 = vmatprep.subr.bf16.mxu1 %v5268_v24 }
 0x1cc   : > { %4324 = vmatmul.mubr.msk.bf16.gmra.mrb[12].mxu0 %vm689_vm0, %v5858_v27  ;;  %v5266_v27 = vld [vmem:[%s7090_s3 + $0xb0] ss:$8 sps:$4 sm:$0xff]  }
 0x1cd   : > { %1941 = vmatprep.mubr.bf16.mxu0 %v7101_v34  ;;  %2394 = vmatpush1.bf16.msra.mxu1 %v5266_v27 }
 0x1d4   : > { %4325 = vmatmul.mubr.msk.bf16.gmra.mrb[16].mxu0 %vm689_vm0, %v5868_v30  ;;  %v5271_v30 = vld [vmem:[%s7090_s3 + $0xc4] ss:$8 sps:$4 sm:$0xff]  }
 0x1d5   : > { %1951 = vmatprep.mubr.bf16.mxu0 %v7101_v34  ;;  %2395 = vmatprep.subr.bf16.mxu1 %v5271_v30 }
 0x1dc   : > { %4326 = vmatmul.mubr.msk.bf16.gmra.mrb[20].mxu0 %vm689_vm0, %v5881_v33  ;;  %v5269_v33 = vld [vmem:[%s7090_s3 + $0xc0] ss:$8 sps:$4 sm:$0xff]  }
 0x1dd   : > { %1961 = vmatprep.mubr.bf16.mxu0 %v7101_v34  ;;  %2396 = vmatpush1.bf16.msra.mxu1 %v5269_v33 }
 0x1de   : > { %2397 = vmatprep.subr.bf16.mxu1 %v5274_v39 }
 0x1e1   : > { %2398 = vmatpush1.bf16.msra.mxu1 %v5272_v41 }
 0x1e2   : > { %2399 = vmatprep.subr.bf16.mxu1 %v5277_v42 }
 0x1e4   : > { %4327 = vmatmul.mubr.msk.bf16.gmra.mrb[24].mxu0 %vm689_vm0, %v5894_v37  ;;  %v575_v37 = vld [vmem:[%s5727_s14 + $0xf8] sm:$0xff] }
 0x1e5   : > { %1971 = vmatprep.mubr.bf16.mxu0 %v7101_v34 }
 0x1ec   : > { %4328 = vmatmul.mubr.msk.bf16.gmra.mrb[28].mxu0 %vm689_vm0, %v5907_v40  ;;  %v1792_v40 = vpack.c.bf16 %v575_v37, %v574_v36  ;;  %v6376_v36 = vrot.slane %v2098_v31, %v7099_v32 }
 0x1ed   : > { %1981 = vmatprep.mubr.bf16.mxu0 %v7101_v34 }
 0x1f4   : > { %4329 = vmatmul.mubr.msk.bf16.gmra.mrb[32].mxu0 %vm689_vm0, %v5920_v43  ;;  %v5275_v43 = vld [vmem:[%s7090_s3 + $0xe0] ss:$8 sps:$4 sm:$0xff]  }
 0x1f5   : > { %1991 = vmatprep.mubr.bf16.mxu0 %v7101_v34  ;;  %2400 = vmatpush1.bf16.msra.mxu1 %v5275_v43 }
 0x1f6   : > { %2401 = vmatprep.subr.bf16.mxu1 %v5280_v44 }
 0x1f9   : > { %2402 = vmatpush1.bf16.msra.mxu1 %v5278_v45 }
 0x1fa   : > { %2550 = vmatprep.subr.bf16.mxu1 %v5283_v4 }
 0x1fc   : > { %4330 = vmatmul.mubr.msk.bf16.gmra.mrb[36].mxu0 %vm689_vm0, %v5933_v46  ;;  %v6280_v46 = vpop.f32.mrb[0].mxu1 }
 0x1fd   : > { %2001 = vmatprep.mubr.bf16.mxu0 %v7101_v34  ;;  %v6282_v47 = vpop.f32.mrb[1].mxu1 }
 0x1fe   : > { %v6284_v48 = vpop.f32.mrb[2].mxu1 }
 0x204   : > { %4331 = vmatmul.mubr.msk.bf16.gmra.mrb[40].mxu0 %vm689_vm0, %v5946_v49  ;;  %v6286_v49 = vpop.f32.mrb[3].mxu1 }
 0x205   : > { %2011 = vmatprep.mubr.bf16.mxu0 %v7101_v34  ;;  %v6288_v50 = vpop.f32.mrb[4].mxu1 }
 0x206   : > { %v6290_v51 = vpop.f32.mrb[5].mxu1 }
 0x20c   : > { %4332 = vmatmul.mubr.msk.bf16.gmra.mrb[44].mxu0 %vm689_vm0, %v5959_v52  ;;  %v6292_v52 = vpop.f32.mrb[6].mxu1 }
 0x20d   : > { %2021 = vmatprep.mubr.bf16.mxu0 %v7101_v34  ;;  %v6294_v53 = vpop.f32.mrb[7].mxu1 }
 0x20e   : > { %v6296_v54 = vpop.f32.mrb[8].mxu1 }
 0x20f   : > { %v6298_v56 = vpop.f32.mrb[9].mxu1 }
 0x210   : > { %v6300_v57 = vpop.f32.mrb[10].mxu1 }
 0x211   : > { %v6302_v58 = vpop.f32.mrb[11].mxu1 }
 0x212   : > { %v6304_v59 = vpop.f32.mrb[12].mxu1 }
 0x213   : > { %v6306_v60 = vpop.f32.mrb[13].mxu1 }
 0x214   : > { %4333 = vmatmul.mubr.msk.bf16.gmra.mrb[48].mxu0 %vm689_vm0, %v6110_v16  ;;  %v6308_v61 = vpop.f32.mrb[14].mxu1 }
 0x215   : > { %2031 = vmatprep.mubr.bf16.mxu0 %v7101_v34  ;;  %v6310_v62 = vpop.f32.mrb[15].mxu1 }
 0x216   : > { %v6312_v0 = vpop.f32.mrb[16].mxu1 }
 0x217   : > { %v6314_v1 = vpop.f32.mrb[17].mxu1 }
 0x218   : > { %v6316_v2 = vpop.f32.mrb[18].mxu1 }
 0x219   : > { %v6318_v3 = vpop.f32.mrb[19].mxu1 }
 0x21a   : > { %v6323_v6 = vpop.f32.mrb[20].mxu1 }
 0x21b   : > { %v6325_v7 = vpop.f32.mrb[21].mxu1 }
 0x21c   : > { %4334 = vmatmul.mubr.msk.bf16.gmra.mrb[52].mxu0 %vm689_vm0, %v1792_v40  ;;  %v6327_v8 = vpop.f32.mrb[22].mxu1 }
 0x21d   : > { %v6329_v9 = vpop.f32.mrb[23].mxu1 }
 0x21e   : > { %v6331_v10 = vpop.f32.mrb[24].mxu1 }
 0x21f   : > { %v6333_v11 = vpop.f32.mrb[25].mxu1 }
 0x220   : > { %v6335_v12 = vpop.f32.mrb[26].mxu1 }
 0x221   : > { %v6337_v13 = vpop.f32.mrb[27].mxu1 }
 0x222   : > { %v6339_v14 = vpop.f32.mrb[28].mxu1 }
 0x223   : > { %v6341_v15 = vpop.f32.mrb[29].mxu1 }
 0x224   : > { %v6343_v16 = vpop.f32.mrb[30].mxu1 }
 0x225   : > { %v6345_v17 = vpop.f32.mrb[31].mxu1 }
 0x226   : > { %v6347_v19 = vpop.f32.mrb[32].mxu1 }
 0x227   : > { %v6349_v20 = vpop.f32.mrb[33].mxu1 }
 0x228   : > { %v6351_v21 = vpop.f32.mrb[34].mxu1 }
 0x229   : > { %v6353_v23 = vpop.f32.mrb[35].mxu1 }
 0x22a   : > { %v6355_v55 = vpop.f32.mrb[36].mxu1 }
 0x22b   : > { %v6357_v25 = vpop.f32.mrb[37].mxu1 }
 0x22c   : > { %v6359_v26 = vpop.f32.mrb[38].mxu1 }
 0x22d   : > { %v6361_v28 = vpop.f32.mrb[39].mxu1 }
 0x287   : > { %v1903_v38 = vpop.f32.mrb[0].mxu0 }
 0x288   : > { %v2110_v18 = vadd.f32 %v6372_v35, %v1903_v38  ;;  %v1905_v22 = vpop.f32.mrb[1].mxu0 }
 0x289   : > { %v2111_v24 = vadd.f32 %v6376_v36, %v1905_v22  ;;  %v1907_v27 = vpop.f32.mrb[2].mxu0 }
 0x28a   : > { %v2166_v30 = vmax.f32 %v2110_v18, 0.0  ;;  %v2112_v33 = vadd.f32 %v6372_v35, %v1907_v27  ;;  %v1909_v37 = vpop.f32.mrb[3].mxu0 }
 0x28b   : > { %v2167_v39 = vmax.f32 %v2111_v24, 0.0  ;;  %v2113_v40 = vadd.f32 %v6376_v36, %v1909_v37 }
 0x28c   : > { %v2168_v41 = vmax.f32 %v2112_v33, 0.0 }
 0x28d   : > { %v2222_v42 = vmax.f32 %v2166_v30, %v2167_v39  ;;  %v2169_v43 = vmax.f32 %v2113_v40, 0.0 }
 0x28f   : > { %v2223_v44 = vmax.f32 %v2168_v41, %v2169_v43  ;;  %v1913_v45 = vpop.f32.mrb[4].mxu0 }
 0x290   : > { %v2114_v4 = vadd.f32 %v6372_v35, %v1913_v45  ;;  %v1915_v63 = vpop.f32.mrb[5].mxu0 }
 0x291   : > { %v2250_v31 = vmax.f32 %v2222_v42, %v2223_v44  ;;  %v2115_v38 = vadd.f32 %v6376_v36, %v1915_v63  ;;  %v1917_v22 = vpop.f32.mrb[6].mxu0 }
 0x292   : > { %v2170_v32 = vmax.f32 %v2114_v4, 0.0  ;;  %v2116_v18 = vadd.f32 %v6372_v35, %v1917_v22  ;;  %v1919_v27 = vpop.f32.mrb[7].mxu0 }
 0x293   : > { %v2171_v5 = vmax.f32 %v2115_v38, 0.0  ;;  %v2117_v24 = vadd.f32 %v6376_v36, %v1919_v27 }
 0x294   : > { %v2172_v37 = vmax.f32 %v2116_v18, 0.0 }
 0x295   : > { %v2224_v33 = vmax.f32 %v2170_v32, %v2171_v5  ;;  %v2173_v30 = vmax.f32 %v2117_v24, 0.0 }
 0x297   : > { %v2225_v39 = vmax.f32 %v2172_v37, %v2173_v30  ;;  %v1923_v40 = vpop.f32.mrb[8].mxu0 }
 0x298   : > { %v2118_v41 = vadd.f32 %v6372_v35, %v1923_v40  ;;  %v1925_v43 = vpop.f32.mrb[9].mxu0 }
 0x299   : > { %v2251_v45 = vmax.f32 %v2224_v33, %v2225_v39  ;;  %v2119_v42 = vadd.f32 %v6376_v36, %v1925_v43  ;;  %v1927_v44 = vpop.f32.mrb[10].mxu0 }
 0x29a   : > { %v2174_v63 = vmax.f32 %v2118_v41, 0.0  ;;  %v2120_v4 = vadd.f32 %v6372_v35, %v1927_v44  ;;  %v1929_v22 = vpop.f32.mrb[11].mxu0 }
 0x29b   : > { %v6389_v34 = vpack.c.bf16 %v2251_v45, %v2250_v31  ;;  %v2175_v38 = vmax.f32 %v2119_v42, 0.0  ;;  %v2121_v18 = vadd.f32 %v6376_v36, %v1929_v22  ;;  %v5281_v42 = vld [vmem:[%s7090_s3] ss:$8 sps:$4 sm:$0xff]  }
 0x29c   : > { %v2176_v5 = vmax.f32 %v2120_v4, 0.0 }
 0x29d   : > { %v2226_v32 = vmax.f32 %v2174_v63, %v2175_v38  ;;  %v2177_v27 = vmax.f32 %v2121_v18, 0.0  ;;  %v5286_v38 = vld [vmem:[%s7090_s3 + $0x14] ss:$8 sps:$4 sm:$0xff]  }
 0x29f   : > { %v2227_v24 = vmax.f32 %v2176_v5, %v2177_v27  ;;  %v1933_v37 = vpop.f32.mrb[12].mxu0  ;;  %v7105_v27 = vmov 0  }
 0x2a0   : > { %v2122_v30 = vadd.f32 %v6372_v35, %v1933_v37  ;;  %v1935_v33 = vpop.f32.mrb[13].mxu0 }
 0x2a1   : > { %v2252_v39 = vmax.f32 %v2226_v32, %v2227_v24  ;;  %v2123_v40 = vadd.f32 %v6376_v36, %v1935_v33  ;;  %v1937_v41 = vpop.f32.mrb[14].mxu0  ;;  %v5284_v24 = vld [vmem:[%s7090_s3 + $0x10] ss:$8 sps:$4 sm:$0xff]  }
 0x2a2   : > { %v2178_v43 = vmax.f32 %v2122_v30, 0.0  ;;  %v2124_v44 = vadd.f32 %v6372_v35, %v1937_v41  ;;  %v1939_v31 = vpop.f32.mrb[15].mxu0  ;;  %v5289_v30 = vld [vmem:[%s7090_s3 + $0x24] ss:$8 sps:$4 sm:$0xff]  }
 0x2a3   : > { %v2285_v4 = vpack.c.bf16 %v2252_v39, %v2251_v45  ;;  %v2179_v63 = vmax.f32 %v2123_v40, 0.0  ;;  %v2125_v22 = vadd.f32 %v6376_v36, %v1939_v31 }
 0x2a4   : > { %v2180_v18 = vmax.f32 %v2124_v44, 0.0 }
 0x2a5   : > { %v2228_v5 = vmax.f32 %v2178_v43, %v2179_v63  ;;  %v2181_v32 = vmax.f32 %v2125_v22, 0.0  ;;  %2420 = vmatmul.mubr.bf16.vlgmr.msra.gmra.mrb[40].mxu1 %v2285_v4  ;;  %v5287_v63 = vld [vmem:[%s7090_s3 + $0x20] ss:$8 sps:$4 sm:$0xff]  }
 0x2a6   : > { %2429 = vmatprep.mubr.bf16.mxu1 %v7105_v27  ;;  %2551 = vmatpush1.bf16.msra.mxu1 %v5281_v42 }
 0x2a7   : > { %v2229_v37 = vmax.f32 %v2180_v18, %v2181_v32  ;;  %v1943_v45 = vpop.f32.mrb[16].mxu0  ;;  %2552 = vmatprep.subr.bf16.mxu1 %v5286_v38 }
 0x2a8   : > { %v4821_v33 = vadd.f32 %v1943_v45, %v6280_v46  ;;  %v1945_v40 = vpop.f32.mrb[17].mxu0  ;;  %v5292_v46 = vld [vmem:[%s7090_s3 + $0x34] ss:$8 sps:$4 sm:$0xff]  }
 0x2a9   : > { %v2253_v41 = vmax.f32 %v2228_v5, %v2229_v37  ;;  %v4822_v43 = vadd.f32 %v1945_v40, %v6282_v47  ;;  %v1947_v44 = vpop.f32.mrb[18].mxu0  ;;  %v5290_v37 = vld [vmem:[%s7090_s3 + $0x30] ss:$8 sps:$4 sm:$0xff]  }
 0x2aa   : > { %v2126_v31 = vadd.f32 %v4821_v33, %v6372_v35  ;;  %v4823_v42 = vadd.f32 %v1947_v44, %v6284_v48  ;;  %v1949_v4 = vpop.f32.mrb[19].mxu0  ;;  %2553 = vmatpush1.bf16.msra.mxu1 %v5284_v24 }
 0x2ab   : > { %v2127_v22 = vadd.f32 %v4822_v43, %v6376_v36  ;;  %v4824_v38 = vadd.f32 %v1949_v4, %v6286_v49  ;;  %2554 = vmatprep.subr.bf16.mxu1 %v5289_v30  ;;  %v6421_v47 = vpack.c.bf16 %v2253_v41, %v2252_v39  ;;  %v5295_v39 = vld [vmem:[%s7090_s3 + $0x44] ss:$8 sps:$4 sm:$0xff]  }
 0x2ac   : > { %v2182_v18 = vmax.f32 %v2126_v31, 0.0  ;;  %v2128_v48 = vadd.f32 %v4823_v42, %v6372_v35 }
 0x2ad   : > { %v2183_v5 = vmax.f32 %v2127_v22, 0.0  ;;  %v2129_v32 = vadd.f32 %v4824_v38, %v6376_v36  ;;  %v5293_v22 = vld [vmem:[%s7090_s3 + $0x40] ss:$8 sps:$4 sm:$0xff]  }
 0x2ae   : > { %v2184_v24 = vmax.f32 %v2128_v48, 0.0  ;;  %2555 = vmatpush1.bf16.msra.mxu1 %v5287_v63 }
 0x2af   : > { %v2230_v49 = vmax.f32 %v2182_v18, %v2183_v5  ;;  %v2185_v45 = vmax.f32 %v2129_v32, 0.0  ;;  %v1953_v30 = vpop.f32.mrb[20].mxu0  ;;  %2556 = vmatprep.subr.bf16.mxu1 %v5292_v46 }
 0x2b0   : > { %v4825_v33 = vadd.f32 %v1953_v30, %v6288_v50  ;;  %v1955_v40 = vpop.f32.mrb[21].mxu0  ;;  %v5301_v30 = vld [vmem:[%s7090_s3 + $0x64] ss:$8 sps:$4 sm:$0xff]  }
 0x2b1   : > { %v2231_v43 = vmax.f32 %v2184_v24, %v2185_v45  ;;  %v4826_v44 = vadd.f32 %v1955_v40, %v6290_v51  ;;  %v1957_v31 = vpop.f32.mrb[22].mxu0  ;;  %v5298_v51 = vld [vmem:[%s7090_s3 + $0x54] ss:$8 sps:$4 sm:$0xff]  }
 0x2b2   : > { %v2130_v42 = vadd.f32 %v4825_v33, %v6372_v35  ;;  %v4827_v4 = vadd.f32 %v1957_v31, %v6292_v52  ;;  %v1959_v63 = vpop.f32.mrb[23].mxu0  ;;  %2557 = vmatpush1.bf16.msra.mxu1 %v5290_v37 }
 0x2b3   : > { %v2131_v38 = vadd.f32 %v4826_v44, %v6376_v36  ;;  %v4828_v46 = vadd.f32 %v1959_v63, %v6294_v53  ;;  %v2254_v50 = vmax.f32 %v2230_v49, %v2231_v43  ;;  %2558 = vmatprep.subr.bf16.mxu1 %v5295_v39  ;;  %v5296_v53 = vld [vmem:[%s7090_s3 + $0x50] ss:$8 sps:$4 sm:$0xff]  }
 0x2b4   : > { %v2186_v18 = vmax.f32 %v2130_v42, 0.0  ;;  %v2132_v48 = vadd.f32 %v4827_v4, %v6372_v35  ;;  %v5299_v4 = vld [vmem:[%s7090_s3 + $0x60] ss:$8 sps:$4 sm:$0xff]  }
 0x2b5   : > { %v2187_v52 = vmax.f32 %v2131_v38, 0.0  ;;  %v2133_v5 = vadd.f32 %v4828_v46, %v6376_v36  ;;  %v6445_v32 = vpack.c.bf16 %v2254_v50, %v2253_v41 }
 0x2b6   : > { %v2188_v24 = vmax.f32 %v2132_v48, 0.0  ;;  %2559 = vmatpush1.bf16.msra.mxu1 %v5293_v22 }
 0x2b7   : > { %v2232_v37 = vmax.f32 %v2186_v18, %v2187_v52  ;;  %v2189_v49 = vmax.f32 %v2133_v5, 0.0  ;;  %v1963_v45 = vpop.f32.mrb[24].mxu0  ;;  %2430 = vmatmul.mubr.bf16.gmra.mrb[44].mxu1 %v6445_v32  ;;  %2560 = vmatprep.subr.bf16.mxu1 %v5298_v51 }
 0x2b8   : > { %v4829_v39 = vadd.f32 %v1963_v45, %v6296_v54  ;;  %v1965_v41 = vpop.f32.mrb[25].mxu0  ;;  %2439 = vmatprep.mubr.bf16.mxu1 %v7105_v27 }
 0x2b9   : > { %v2233_v33 = vmax.f32 %v2188_v24, %v2189_v49  ;;  %v4830_v40 = vadd.f32 %v1965_v41, %v6298_v56  ;;  %v1967_v43 = vpop.f32.mrb[26].mxu0  ;;  %v5304_v56 = vld [vmem:[%s7090_s3 + $0x74] ss:$8 sps:$4 sm:$0xff]  }
 0x2ba   : > { %v2134_v44 = vadd.f32 %v4829_v39, %v6372_v35  ;;  %v4831_v31 = vadd.f32 %v1967_v43, %v6300_v57  ;;  %v1969_v42 = vpop.f32.mrb[27].mxu0  ;;  %2561 = vmatpush1.bf16.msra.mxu1 %v5296_v53  ;;  %v5307_v53 = vld [vmem:[%s7090_s3 + $0x104] ss:$8 sps:$4 sm:$0xff]  }
 0x2bb   : > { %v2135_v63 = vadd.f32 %v4830_v40, %v6376_v36  ;;  %v4832_v54 = vadd.f32 %v1969_v42, %v6302_v58  ;;  %v2255_v22 = vmax.f32 %v2232_v37, %v2233_v33  ;;  %2562 = vmatprep.subr.bf16.mxu1 %v5301_v30  ;;  %v5302_v58 = vld [vmem:[%s7090_s3 + $0x70] ss:$8 sps:$4 sm:$0xff]  }
 0x2bc   : > { %v2190_v38 = vmax.f32 %v2134_v44, 0.0  ;;  %v2136_v46 = vadd.f32 %v4831_v31, %v6372_v35 }
 0x2bd   : > { %v2191_v57 = vmax.f32 %v2135_v63, 0.0  ;;  %v2137_v51 = vadd.f32 %v4832_v54, %v6376_v36  ;;  %v6469_v18 = vpack.c.bf16 %v2255_v22, %v2254_v50 }
 0x2be   : > { %v2192_v48 = vmax.f32 %v2136_v46, 0.0  ;;  %2563 = vmatpush1.bf16.msra.mxu1 %v5299_v4 }
 0x2bf   : > { %v2234_v52 = vmax.f32 %v2190_v38, %v2191_v57  ;;  %v2193_v5 = vmax.f32 %v2137_v51, 0.0  ;;  %v1973_v24 = vpop.f32.mrb[28].mxu0  ;;  %2564 = vmatprep.subr.bf16.mxu1 %v5304_v56 }
 0x2c0   : > { %v4833_v37 = vadd.f32 %v1973_v24, %v6304_v59  ;;  %v1975_v49 = vpop.f32.mrb[29].mxu0 }
 0x2c1   : > { %v2235_v45 = vmax.f32 %v2192_v48, %v2193_v5  ;;  %v4834_v50 = vadd.f32 %v1975_v49, %v6306_v60  ;;  %v1977_v30 = vpop.f32.mrb[30].mxu0 }
 0x2c2   : > { %v2138_v39 = vadd.f32 %v4833_v37, %v6372_v35  ;;  %v4835_v41 = vadd.f32 %v1977_v30, %v6308_v61  ;;  %v1979_v33 = vpop.f32.mrb[31].mxu0  ;;  %2565 = vmatpush1.bf16.msra.mxu1 %v5302_v58 }
 0x2c3   : > { %v2139_v40 = vadd.f32 %v4834_v50, %v6376_v36  ;;  %v4836_v43 = vadd.f32 %v1979_v33, %v6310_v62  ;;  %v2256_v44 = vmax.f32 %v2234_v52, %v2235_v45  ;;  %2731 = vmatprep.subr.bf16.mxu1 %v5307_v53 }
 0x2c4   : > { %v2194_v31 = vmax.f32 %v2138_v39, 0.0  ;;  %v2140_v59 = vadd.f32 %v4835_v41, %v6372_v35 }
 0x2c5   : > { %v2195_v42 = vmax.f32 %v2139_v40, 0.0  ;;  %v2141_v4 = vadd.f32 %v4836_v43, %v6376_v36  ;;  %v6485_v60 = vpack.c.bf16 %v2256_v44, %v2255_v22 }
 0x2c6   : > { %v2196_v63 = vmax.f32 %v2140_v59, 0.0 }
 0x2c7   : > { %v2236_v54 = vmax.f32 %v2194_v31, %v2195_v42  ;;  %v2197_v56 = vmax.f32 %v2141_v4, 0.0  ;;  %v1983_v61 = vpop.f32.mrb[32].mxu0  ;;  %2440 = vmatmul.mubr.bf16.gmra.mrb[48].mxu1 %v6485_v60 }
 0x2c8   : > { %v4837_v38 = vadd.f32 %v1983_v61, %v6312_v0  ;;  %v1985_v46 = vpop.f32.mrb[33].mxu0  ;;  %2449 = vmatprep.mubr.bf16.mxu1 %v7105_v27 }
 0x2c9   : > { %v2237_v62 = vmax.f32 %v2196_v63, %v2197_v56  ;;  %v4838_v57 = vadd.f32 %v1985_v46, %v6314_v1  ;;  %v1987_v51 = vpop.f32.mrb[34].mxu0 }
 0x2ca   : > { %v2142_v48 = vadd.f32 %v4837_v38, %v6372_v35  ;;  %v4839_v22 = vadd.f32 %v1987_v51, %v6316_v2  ;;  %v1989_v58 = vpop.f32.mrb[35].mxu0 }
 0x2cb   : > { %v2143_v52 = vadd.f32 %v4838_v57, %v6376_v36  ;;  %v4840_v5 = vadd.f32 %v1989_v58, %v6318_v3  ;;  %v2257_v24 = vmax.f32 %v2236_v54, %v2237_v62 }
 0x2cc   : > { %v2198_v53 = vmax.f32 %v2142_v48, 0.0  ;;  %v2144_v0 = vadd.f32 %v4839_v22, %v6372_v35 }
 0x2cd   : > { %v2199_v37 = vmax.f32 %v2143_v52, 0.0  ;;  %v2145_v49 = vadd.f32 %v4840_v5, %v6376_v36  ;;  %v6497_v45 = vpack.c.bf16 %v2257_v24, %v2256_v44 }
 0x2ce   : > { %v2200_v1 = vmax.f32 %v2144_v0, 0.0 }
 0x2cf   : > { %v2238_v50 = vmax.f32 %v2198_v53, %v2199_v37  ;;  %v2201_v30 = vmax.f32 %v2145_v49, 0.0  ;;  %v1993_v39 = vpop.f32.mrb[36].mxu0 }
 0x2d0   : > { %v4841_v2 = vadd.f32 %v1993_v39, %v6323_v6  ;;  %v1995_v41 = vpop.f32.mrb[37].mxu0 }
 0x2d1   : > { %v2239_v33 = vmax.f32 %v2200_v1, %v2201_v30  ;;  %v4842_v40 = vadd.f32 %v1995_v41, %v6325_v7  ;;  %v1997_v3 = vpop.f32.mrb[38].mxu0 }
 0x2d2   : > { %v2146_v43 = vadd.f32 %v4841_v2, %v6372_v35  ;;  %v4843_v31 = vadd.f32 %v1997_v3, %v6327_v8  ;;  %v1999_v59 = vpop.f32.mrb[39].mxu0 }
 0x2d3   : > { %v2147_v42 = vadd.f32 %v4842_v40, %v6376_v36  ;;  %v4844_v44 = vadd.f32 %v1999_v59, %v6329_v9  ;;  %v2258_v4 = vmax.f32 %v2238_v50, %v2239_v33 }
 0x2d4   : > { %v2202_v63 = vmax.f32 %v2146_v43, 0.0  ;;  %v2148_v54 = vadd.f32 %v4843_v31, %v6372_v35 }
 0x2d5   : > { %v2203_v56 = vmax.f32 %v2147_v42, 0.0  ;;  %v2149_v6 = vadd.f32 %v4844_v44, %v6376_v36  ;;  %v6507_v61 = vpack.c.bf16 %v2258_v4, %v2257_v24 }
 0x2d6   : > { %v2204_v7 = vmax.f32 %v2148_v54, 0.0 }
 0x2d7   : > { %v2240_v38 = vmax.f32 %v2202_v63, %v2203_v56  ;;  %v2205_v46 = vmax.f32 %v2149_v6, 0.0  ;;  %v2003_v62 = vpop.f32.mrb[40].mxu0  ;;  %2450 = vmatmul.mubr.bf16.gmra.mrb[52].mxu1 %v6507_v61 }
 0x2d8   : > { %v4845_v8 = vadd.f32 %v2003_v62, %v6331_v10  ;;  %v2005_v57 = vpop.f32.mrb[41].mxu0  ;;  %2459 = vmatprep.mubr.bf16.mxu1 %v7105_v27 }
 0x2d9   : > { %v2241_v9 = vmax.f32 %v2204_v7, %v2205_v46  ;;  %v4846_v51 = vadd.f32 %v2005_v57, %v6333_v11  ;;  %v2007_v48 = vpop.f32.mrb[42].mxu0 }
 0x2da   : > { %v2150_v22 = vadd.f32 %v4845_v8, %v6372_v35  ;;  %v4847_v58 = vadd.f32 %v2007_v48, %v6335_v12  ;;  %v2009_v52 = vpop.f32.mrb[43].mxu0 }
 0x2db   : > { %v2151_v5 = vadd.f32 %v4846_v51, %v6376_v36  ;;  %v4848_v24 = vadd.f32 %v2009_v52, %v6337_v13  ;;  %v2259_v53 = vmax.f32 %v2240_v38, %v2241_v9  ;;  %v5305_v52 = vld [vmem:[%s7090_s3 + $0x100] ss:$8 sps:$4 sm:$0xff]  }
 0x2dc   : > { %v2206_v0 = vmax.f32 %v2150_v22, 0.0  ;;  %v2152_v10 = vadd.f32 %v4847_v58, %v6372_v35 }
 0x2dd   : > { %v2207_v37 = vmax.f32 %v2151_v5, 0.0  ;;  %v2153_v49 = vadd.f32 %v4848_v24, %v6376_v36  ;;  %v6519_v1 = vpack.c.bf16 %v2259_v53, %v2258_v4 }
 0x2de   : > { %v2208_v11 = vmax.f32 %v2152_v10, 0.0 }
 0x2df   : > { %v2242_v50 = vmax.f32 %v2206_v0, %v2207_v37  ;;  %v2209_v30 = vmax.f32 %v2153_v49, 0.0  ;;  %v2013_v39 = vpop.f32.mrb[44].mxu0 }
 0x2e0   : > { %v4849_v12 = vadd.f32 %v2013_v39, %v6339_v14  ;;  %v2015_v2 = vpop.f32.mrb[45].mxu0 }
 0x2e1   : > { %v2243_v41 = vmax.f32 %v2208_v11, %v2209_v30  ;;  %v4850_v33 = vadd.f32 %v2015_v2, %v6341_v15  ;;  %v2017_v13 = vpop.f32.mrb[46].mxu0  ;;  %v5308_v11 = vld [vmem:[%s7090_s3 + $0x110] ss:$8 sps:$4 sm:$0xff]  }
 0x2e2   : > { %v2154_v40 = vadd.f32 %v4849_v12, %v6372_v35  ;;  %v4851_v3 = vadd.f32 %v2017_v13, %v6343_v16  ;;  %v2019_v43 = vpop.f32.mrb[47].mxu0  ;;  %v5313_v12 = vld [vmem:[%s7090_s3 + $0x124] ss:$8 sps:$4 sm:$0xff]  }
 0x2e3   : > { %v2155_v31 = vadd.f32 %v4850_v33, %v6376_v36  ;;  %v4852_v59 = vadd.f32 %v2019_v43, %v6345_v17  ;;  %v2260_v42 = vmax.f32 %v2242_v50, %v2243_v41 }
 0x2e4   : > { %v2210_v44 = vmax.f32 %v2154_v40, 0.0  ;;  %v2156_v4 = vadd.f32 %v4851_v3, %v6372_v35  ;;  %v5311_v3 = vld [vmem:[%s7090_s3 + $0x120] ss:$8 sps:$4 sm:$0xff]  }
 0x2e5   : > { %v2211_v63 = vmax.f32 %v2155_v31, 0.0  ;;  %v2157_v14 = vadd.f32 %v4852_v59, %v6376_v36  ;;  %v6529_v54 = vpack.c.bf16 %v2260_v42, %v2259_v53 }
 0x2e6   : > { %v2212_v15 = vmax.f32 %v2156_v4, 0.0  ;;  %v5319_v4 = vld [vmem:[%s7090_s3 + $0x144] ss:$8 sps:$4 sm:$0xff]  }
 0x2e7   : > { %v2244_v56 = vmax.f32 %v2210_v44, %v2211_v63  ;;  %v2213_v6 = vmax.f32 %v2157_v14, 0.0  ;;  %v2023_v7 = vpop.f32.mrb[48].mxu0  ;;  %2460 = vmatmul.mubr.bf16.gmra.mrb[56].mxu1 %v6529_v54  ;;  %v5317_v14 = vld [vmem:[%s7090_s3 + $0x140] ss:$8 sps:$4 sm:$0xff]  }
 0x2e8   : > { %v4853_v16 = vadd.f32 %v2023_v7, %v6347_v19  ;;  %v2025_v38 = vpop.f32.mrb[49].mxu0  ;;  %2582 = vmatprep.mubr.bf16.mxu1 %v7105_v27  ;;  %v5325_v7 = vld [vmem:[%s7090_s3 + $0x164] ss:$8 sps:$4 sm:$0xff]  }
 0x2e9   : > { %v2245_v17 = vmax.f32 %v2212_v15, %v2213_v6  ;;  %v4854_v46 = vadd.f32 %v2025_v38, %v6349_v20  ;;  %v2027_v62 = vpop.f32.mrb[50].mxu0  ;;  %v5322_v15 = vld [vmem:[%s7090_s3 + $0x154] ss:$8 sps:$4 sm:$0xff]   ;;  %v5320_v6 = vld [vmem:[%s7090_s3 + $0x150] ss:$8 sps:$4 sm:$0xff]  }
 0x2ea   : > { %v2158_v8 = vadd.f32 %v4853_v16, %v6372_v35  ;;  %v4855_v57 = vadd.f32 %v2027_v62, %v6351_v21  ;;  %v2029_v9 = vpop.f32.mrb[51].mxu0  ;;  %v5310_v21 = vld [vmem:[%s7090_s3 + $0x114] ss:$8 sps:$4 sm:$0xff]   ;;  %v5323_v16 = vld [vmem:[%s7090_s3 + $0x160] ss:$8 sps:$4 sm:$0xff]  }
 0x2eb   : > { %v2159_v51 = vadd.f32 %v4854_v46, %v6376_v36  ;;  %v4856_v48 = vadd.f32 %v2029_v9, %v6353_v23  ;;  %v6539_v22 = vmax.f32 %v2244_v56, %v2245_v17  ;;  %v5328_v38 = vld [vmem:[%s7090_s3 + $0x174] ss:$8 sps:$4 sm:$0xff]   ;;  %v5326_v17 = vld [vmem:[%s7090_s3 + $0x170] ss:$8 sps:$4 sm:$0xff]   ;;  %v5331_v46 = vld [vmem:[%s7090_s3 + $0x184] ss:$8 sps:$4 sm:$0xff]  }
 0x2ec   : > { %v2214_v58 = vmax.f32 %v2158_v8, 0.0  ;;  %v2160_v19 = vadd.f32 %v4855_v57, %v6372_v35  ;;  %v5329_v62 = vld [vmem:[%s7090_s3 + $0x180] ss:$8 sps:$4 sm:$0xff]   ;;  %v5334_v8 = vld [vmem:[%s7090_s3 + $0x194] ss:$8 sps:$4 sm:$0xff]  }
 0x2ed   : > { %v2215_v20 = vmax.f32 %v2159_v51, 0.0  ;;  %v2161_v5 = vadd.f32 %v4856_v48, %v6376_v36  ;;  %v6550_v24 = vpack.c.bf16 %v6539_v22, %v2260_v42  ;;  %v5332_v57 = vld [vmem:[%s7090_s3 + $0x190] ss:$8 sps:$4 sm:$0xff]   ;;  %v5337_v9 = vld [vmem:[%s7090_s3 + $0x1a4] ss:$8 sps:$4 sm:$0xff]  }
 0x2ee   : > { %v2216_v23 = vmax.f32 %v2160_v19, 0.0  ;;  %v5335_v51 = vld [vmem:[%s7090_s3 + $0x1a0] ss:$8 sps:$4 sm:$0xff]   ;;  %v5338_v48 = vld [vmem:[%s7090_s3 + $0x1b0] ss:$8 sps:$4 sm:$0xff]  }
 0x2ef   : > { %v2246_v53 = vmax.f32 %v2214_v58, %v2215_v20  ;;  %v2217_v0 = vmax.f32 %v2161_v5, 0.0  ;;  %v2033_v10 = vpop.f32.mrb[52].mxu0  ;;  %2583 = vmatmul.mubr.bf16.vlgmr.msra.gmra.mrb[40].mxu1 %v6389_v34  ;;  %v5343_v58 = vld [vmem:[%s7090_s3 + $0x1c4] ss:$8 sps:$4 sm:$0xff]   ;;  %v5341_v19 = vld [vmem:[%s7090_s3 + $0x1c0] ss:$8 sps:$4 sm:$0xff]  }
 0x2f0   : > { %v4857_v37 = vadd.f32 %v2033_v10, %v6355_v55  ;;  %v2035_v49 = vpop.f32.mrb[53].mxu0  ;;  %2732 = vmatpush1.bf16.msra.mxu1 %v5305_v52  ;;  %2592 = vmatprep.mubr.bf16.mxu1 %v7105_v27  ;;  %v5346_v52 = vld [vmem:[%s7090_s3 + $0x1d4] ss:$8 sps:$4 sm:$0xff]   ;;  %v5344_v20 = vld [vmem:[%s7090_s3 + $0x1d0] ss:$8 sps:$4 sm:$0xff]  }
 0x2f1   : > { %v2247_v50 = vmax.f32 %v2216_v23, %v2217_v0  ;;  %v4858_v30 = vadd.f32 %v2035_v49, %v6357_v25  ;;  %v2037_v39 = vpop.f32.mrb[54].mxu0  ;;  %2733 = vmatprep.subr.bf16.mxu1 %v5310_v21  ;;  %v5349_v5 = vld [vmem:[%s7090_s3 + $0x1e4] ss:$8 sps:$4 sm:$0xff]   ;;  %v5347_v21 = vld [vmem:[%s7090_s3 + $0x1e0] ss:$8 sps:$4 sm:$0xff]  }
 0x2f2   : > { %v2162_v34 = vadd.f32 %v4857_v37, %v6372_v35  ;;  %v4859_v55 = vadd.f32 %v2037_v39, %v6359_v26  ;;  %v2039_v2 = vpop.f32.mrb[55].mxu0  ;;  %v5316_v26 = vld [vmem:[%s7090_s3 + $0x134] ss:$8 sps:$4 sm:$0xff]   ;;  %v5355_v0 = vld [vmem:[%s7090_s3 + $0x204] ss:$8 sps:$4 sm:$0xff]  }
 0x2f3   : > { %v2163_v41 = vadd.f32 %v4858_v30, %v6376_v36  ;;  %v4860_v33 = vadd.f32 %v2039_v2, %v6361_v28  ;;  %v6566_v13 = vmax.f32 %v2246_v53, %v2247_v50  ;;  %v5352_v23 = vld [vmem:[%s7090_s3 + $0x1f4] ss:$8 sps:$4 sm:$0xff]   ;;  %v5350_v53 = vld [vmem:[%s7090_s3 + $0x1f0] ss:$8 sps:$4 sm:$0xff]   ;;  %v5353_v10 = vld [vmem:[%s7090_s3 + $0x200] ss:$8 sps:$4 sm:$0xff]  }
 0x2f4   : > { %v2218_v40 = vmax.f32 %v2162_v34, 0.0  ;;  %v2164_v25 = vadd.f32 %v4859_v55, %v6372_v35  ;;  %2734 = vmatpush1.bf16.msra.mxu1 %v5308_v11  ;;  %v5314_v35 = vld [vmem:[%s7090_s3 + $0x130] ss:$8 sps:$4 sm:$0xff]   ;;  %v5358_v37 = vld [vmem:[%s7090_s3 + $0x214] ss:$8 sps:$4 sm:$0xff]  }
 0x2f5   : > { %v2219_v43 = vmax.f32 %v2163_v41, 0.0  ;;  %v2165_v31 = vadd.f32 %v4860_v33, %v6376_v36  ;;  %2735 = vmatprep.subr.bf16.mxu1 %v5313_v12  ;;  %v2834_v28 = vpack.c.bf16 %v6566_v13, %v6539_v22  ;;  %v5356_v49 = vld [vmem:[%s7090_s3 + $0x210] ss:$8 sps:$4 sm:$0xff]   ;;  %v5361_v11 = vld [vmem:[%s7090_s3 + $0x224] ss:$8 sps:$4 sm:$0xff]   ;;  %v5498_v33 = vmov 0.0  }
 0x2f6   : > { %v2220_v59 = vmax.f32 %v2164_v25, 0.0  ;;  %v5359_v50 = vld [vmem:[%s7090_s3 + $0x220] ss:$8 sps:$4 sm:$0xff]   ;;  %v5362_v30 = vld [vmem:[%s7090_s3 + $0x230] ss:$8 sps:$4 sm:$0xff]   ;;  %v7106_v25 = vsub.s32 0, %v6363_v29 }
 0x2f7   : > { %v2248_v42 = vmax.f32 %v2218_v40, %v2219_v43  ;;  %v2221_v44 = vmax.f32 %v2165_v31, 0.0  ;;  %2593 = vmatmul.mubr.bf16.gmra.mrb[44].mxu1 %v6421_v47  ;;  %v5367_v39 = vld [vmem:[%s7090_s3 + $0x244] ss:$8 sps:$4 sm:$0xff]   ;;  %v5365_v12 = vld [vmem:[%s7090_s3 + $0x240] ss:$8 sps:$4 sm:$0xff]   ;;  %v5379_v22 = vld [vmem:[%s7092_s5 + $0x50] sm:$0xff]  }
 0x2f8   : > { %2736 = vmatpush1.bf16.msra.mxu1 %v5311_v3  ;;  %2602 = vmatprep.mubr.bf16.mxu1 %v7105_v27  ;;  %v5368_v34 = vld [vmem:[%s7090_s3 + $0x250] ss:$8 sps:$4 sm:$0xff]   ;;  %v5373_v55 = vld [vmem:[%s7090_s3 + $0x264] ss:$8 sps:$4 sm:$0xff]   ;;  %v5371_v2 = vld [vmem:[%s7090_s3 + $0x260] ss:$8 sps:$4 sm:$0xff]  }
 0x2f9   : > { %v2249_v36 = vmax.f32 %v2220_v59, %v2221_v44  ;;  %2737 = vmatprep.subr.bf16.mxu1 %v5316_v26  ;;  %v5374_v41 = vld [vmem:[%s7090_s3 + $0x270] ss:$8 sps:$4 sm:$0xff]   ;;  %v5378_v40 = vld [vmem:[%s7092_s5 + $0x48] sm:$0xff]   ;;  %v7107_v43 = vsub.s32 1, %v6363_v29 }
 0x2fb   : > { %v2263_v63 = vmax.f32 %v2248_v42, %v2249_v36 }
 0x2fc   : > { %2738 = vmatpush1.bf16.msra.mxu1 %v5314_v35 }
 0x2fd   : > { %2739 = vmatprep.subr.bf16.mxu1 %v5319_v4  ;;  %v6593_v56 = vpack.c.bf16 %v2263_v63, %v6566_v13  ;;  %v5382_v13 = vld [vmem:[%s7092_s5 + $0x68] sm:$0xff]  }
 0x2ff   : > { %2603 = vmatmul.mubr.bf16.gmra.mrb[48].mxu1 %v6469_v18 }
 0x300   : > { %2740 = vmatpush1.bf16.msra.mxu1 %v5317_v14  ;;  %2612 = vmatprep.mubr.bf16.mxu1 %v7105_v27 }
 0x301   : > { %2741 = vmatprep.subr.bf16.mxu1 %v5322_v15 }
 0x304   : > { %2742 = vmatpush1.bf16.msra.mxu1 %v5320_v6 }
 0x305   : > { %2743 = vmatprep.subr.bf16.mxu1 %v5325_v7 }
 0x307   : > { %2613 = vmatmul.mubr.bf16.gmra.mrb[52].mxu1 %v6497_v45 }
 0x308   : > { %2622 = vmatprep.mubr.bf16.mxu1 %v7105_v27  ;;  %2744 = vmatpush1.bf16.msra.mxu1 %v5323_v16 }
 0x309   : > { %2745 = vmatprep.subr.bf16.mxu1 %v5328_v38 }
 0x30c   : > { %2746 = vmatpush1.bf16.msra.mxu1 %v5326_v17 }
 0x30d   : > { %2932 = vmatprep.subr.bf16.mxu1 %v5331_v46 }
 0x30f   : > { %2623 = vmatmul.mubr.bf16.gmra.mrb[56].mxu1 %v6519_v1 }
 0x310   : > { %2763 = vmatprep.mubr.bf16.mxu1 %v7105_v27 }
 0x317   : > { %2764 = vmatmul.mubr.bf16.vlgmr.msra.gmra.mrb[40].mxu1 %v6421_v47  ;;  %v5340_v47 = vld [vmem:[%s7090_s3 + $0x1b4] ss:$8 sps:$4 sm:$0xff]  }
 0x318   : > { %2933 = vmatpush1.bf16.msra.mxu1 %v5329_v62  ;;  %2773 = vmatprep.mubr.bf16.mxu1 %v7105_v27 }
 0x319   : > { %2934 = vmatprep.subr.bf16.mxu1 %v5334_v8 }
 0x31c   : > { %2935 = vmatpush1.bf16.msra.mxu1 %v5332_v57 }
 0x31d   : > { %2936 = vmatprep.subr.bf16.mxu1 %v5337_v9 }
 0x31f   : > { %2774 = vmatmul.mubr.bf16.gmra.mrb[44].mxu1 %v6469_v18 }
 0x320   : > { %2937 = vmatpush1.bf16.msra.mxu1 %v5335_v51  ;;  %2783 = vmatprep.mubr.bf16.mxu1 %v7105_v27 }
 0x321   : > { %2938 = vmatprep.subr.bf16.mxu1 %v5340_v47 }
 0x324   : > { %2939 = vmatpush1.bf16.msra.mxu1 %v5338_v48 }
 0x325   : > { %2940 = vmatprep.subr.bf16.mxu1 %v5343_v58 }
 0x327   : > { %2784 = vmatmul.mubr.bf16.gmra.mrb[48].mxu1 %v6497_v45 }
 0x328   : > { %2941 = vmatpush1.bf16.msra.mxu1 %v5341_v19  ;;  %2793 = vmatprep.mubr.bf16.mxu1 %v7105_v27 }
 0x329   : > { %2942 = vmatprep.subr.bf16.mxu1 %v5346_v52 }
 0x32c   : > { %2943 = vmatpush1.bf16.msra.mxu1 %v5344_v20 }
 0x32d   : > { %2944 = vmatprep.subr.bf16.mxu1 %v5349_v5 }
 0x32f   : > { %2794 = vmatmul.mubr.bf16.gmra.mrb[52].mxu1 %v6519_v1 }
 0x330   : > { %2803 = vmatprep.mubr.bf16.mxu1 %v7105_v27  ;;  %2945 = vmatpush1.bf16.msra.mxu1 %v5347_v21 }
 0x331   : > { %2946 = vmatprep.subr.bf16.mxu1 %v5352_v23 }
 0x334   : > { %2947 = vmatpush1.bf16.msra.mxu1 %v5350_v53 }
 0x335   : > { %3133 = vmatprep.subr.bf16.mxu1 %v5355_v0 }
 0x337   : > { %2804 = vmatmul.mubr.bf16.gmra.mrb[56].mxu1 %v6550_v24 }
 0x338   : > { %2964 = vmatprep.mubr.bf16.mxu1 %v7105_v27 }
 0x33f   : > { %2965 = vmatmul.mubr.bf16.vlgmr.msra.gmra.mrb[40].mxu1 %v6445_v32  ;;  %v5364_v32 = vld [vmem:[%s7090_s3 + $0x234] ss:$8 sps:$4 sm:$0xff]  }
 0x340   : > { %3134 = vmatpush1.bf16.msra.mxu1 %v5353_v10  ;;  %2974 = vmatprep.mubr.bf16.mxu1 %v7105_v27 }
 0x341   : > { %3135 = vmatprep.subr.bf16.mxu1 %v5358_v37 }
 0x344   : > { %3136 = vmatpush1.bf16.msra.mxu1 %v5356_v49 }
 0x345   : > { %3137 = vmatprep.subr.bf16.mxu1 %v5361_v11  ;;  %v5385_v11 = vld [vmem:[%s7092_s5] sm:$0xff]  }
 0x347   : > { %2975 = vmatmul.mubr.bf16.gmra.mrb[44].mxu1 %v6485_v60  ;;  %v5370_v60 = vld [vmem:[%s7090_s3 + $0x254] ss:$8 sps:$4 sm:$0xff]  }
 0x348   : > { %3138 = vmatpush1.bf16.msra.mxu1 %v5359_v50  ;;  %2984 = vmatprep.mubr.bf16.mxu1 %v7105_v27 }
 0x349   : > { %3139 = vmatprep.subr.bf16.mxu1 %v5364_v32 }
 0x34c   : > { %3140 = vmatpush1.bf16.msra.mxu1 %v5362_v30 }
 0x34d   : > { %3141 = vmatprep.subr.bf16.mxu1 %v5367_v39 }
 0x34f   : > { %2985 = vmatmul.mubr.bf16.gmra.mrb[48].mxu1 %v6507_v61  ;;  %v5376_v61 = vld [vmem:[%s7090_s3 + $0x274] ss:$8 sps:$4 sm:$0xff]  }
 0x350   : > { %3142 = vmatpush1.bf16.msra.mxu1 %v5365_v12  ;;  %2994 = vmatprep.mubr.bf16.mxu1 %v7105_v27 }
 0x351   : > { %3143 = vmatprep.subr.bf16.mxu1 %v5370_v60 }
 0x354   : > { %3144 = vmatpush1.bf16.msra.mxu1 %v5368_v34  ;;  %v5386_v34 = vld [vmem:[%s7092_s5 + $0x8] sm:$0xff]  }
 0x355   : > { %3145 = vmatprep.subr.bf16.mxu1 %v5373_v55 }
 0x357   : > { %2995 = vmatmul.mubr.bf16.gmra.mrb[52].mxu1 %v6529_v54  ;;  %v5377_v54 = vld [vmem:[%s7092_s5 + $0x40] sm:$0xff]  }
 0x358   : > { %3004 = vmatprep.mubr.bf16.mxu1 %v7105_v27  ;;  %3146 = vmatpush1.bf16.msra.mxu1 %v5371_v2 }
 0x359   : > { %3147 = vmatprep.subr.bf16.mxu1 %v5376_v61 }
 0x35c   : > { %3148 = vmatpush1.bf16.msra.mxu1 %v5374_v41 }
 0x35d   : > { %4669 = vmatprep.subr.bf16.mxu1 %v5498_v33 }
 0x35f   : > { %3005 = vmatmul.mubr.bf16.gmra.mrb[56].mxu1 %v2834_v28 }
 0x360   : > { %3165 = vmatprep.mubr.bf16.mxu1 %v7105_v27 }
 0x367   : > { %3166 = vmatmul.mubr.bf16.vlgmr.msra.gmra.mrb[40].mxu1 %v6469_v18  ;;  %v5380_v18 = vld [vmem:[%s7092_s5 + $0x58] sm:$0xff]  }
 0x368   : > { %3175 = vmatprep.mubr.bf16.mxu1 %v7105_v27  ;;  %4670 = vmatpush3.bf16.msra.mxu1 %v5377_v54 }
 0x369   : > { %4671 = vmatprep.subr.bf16.mxu1 %v5498_v33 }
 0x36c   : > { %4672 = vmatpush3.bf16.msra.mxu1 %v5378_v40 }
 0x36d   : > { %4673 = vmatprep.subr.bf16.mxu1 %v5498_v33 }
 0x36f   : > { %3176 = vmatmul.mubr.bf16.gmra.mrb[44].mxu1 %v6497_v45  ;;  %v5381_v45 = vld [vmem:[%s7092_s5 + $0x60] sm:$0xff]  }
 0x370   : > { %3185 = vmatprep.mubr.bf16.mxu1 %v7105_v27  ;;  %4674 = vmatpush3.bf16.msra.mxu1 %v5379_v22 }
 0x371   : > { %4675 = vmatprep.subr.bf16.mxu1 %v5498_v33 }
 0x374   : > { %4676 = vmatpush3.bf16.msra.mxu1 %v5380_v18 }
 0x375   : > { %4677 = vmatprep.subr.bf16.mxu1 %v5498_v33 }
 0x377   : > { %3186 = vmatmul.mubr.bf16.gmra.mrb[48].mxu1 %v6519_v1  ;;  %v5384_v1 = vld [vmem:[%s7092_s5 + $0x78] sm:$0xff]  }
 0x378   : > { %3195 = vmatprep.mubr.bf16.mxu1 %v7105_v27  ;;  %4678 = vmatpush3.bf16.msra.mxu1 %v5381_v45 }
 0x379   : > { %4679 = vmatprep.subr.bf16.mxu1 %v5498_v33 }
 0x37c   : > { %4680 = vmatpush3.bf16.msra.mxu1 %v5382_v13 }
 0x37d   : > { %4681 = vmatprep.subr.bf16.mxu1 %v5498_v33 }
 0x37f   : > { %3196 = vmatmul.mubr.bf16.gmra.mrb[52].mxu1 %v6550_v24  ;;  %v3236_v24 = vld [vmem:[%s7091_s4] sm:$0x3] }
 0x380   : > { %3205 = vmatprep.mubr.bf16.mxu1 %v7105_v27  ;;  %v5383_v27 = vld [vmem:[%s7092_s5 + $0x70] sm:$0xff]   ;;  %v6783_v3 = vrot.slane %v3236_v24, %v7106_v25  ;;  %v6787_v31 = vrot.slane %v3236_v24, %v7107_v43 }
 0x381   : > { %4682 = vmatpush3.bf16.msra.mxu1 %v5383_v27  ;;  %v5387_v27 = vld [vmem:[%s7092_s5 + $0x10] sm:$0xff]  }
 0x382   : > { %4683 = vmatprep.subr.bf16.mxu1 %v5498_v33 }
 0x385   : > { %4684 = vmatpush3.bf16.msra.mxu1 %v5384_v1 }
 0x386   : > { %4689 = vmatprep.subr.bf16.mxu1 %v5498_v33 }
 0x387   : > { %3206 = vmatmul.mubr.bf16.gmra.mrb[56].mxu1 %v6593_v56 }
 0x388   : > { %4685 = vmatprep.mubr.msk.bf16.mxu1 %vm5499_vm1, %v5498_v33 }
 0x43a   : > { %v3167_v26 = vpop.f32.mrb[40].mxu1 }
 0x43b   : > { %v3248_v28 = vadd.f32 %v6783_v3, %v3167_v26  ;;  %v3169_v59 = vpop.f32.mrb[41].mxu1 }
 0x43c   : > { %v3249_v42 = vadd.f32 %v6787_v31, %v3169_v59  ;;  %v3171_v44 = vpop.f32.mrb[42].mxu1 }
 0x43d   : > { %v3268_v35 = vmax.f32 %v3248_v28, 0.0  ;;  %v3250_v36 = vadd.f32 %v6783_v3, %v3171_v44  ;;  %v3173_v4 = vpop.f32.mrb[43].mxu1  ;;  %v5388_v28 = vld [vmem:[%s7092_s5 + $0x18] sm:$0xff]  }
 0x43e   : > { %v3269_v63 = vmax.f32 %v3249_v42, 0.0  ;;  %v3251_v14 = vadd.f32 %v6787_v31, %v3173_v4 }
 0x43f   : > { %v3270_v15 = vmax.f32 %v3250_v36, 0.0 }
 0x440   : > { %v3288_v56 = vmax.f32 %v3268_v35, %v3269_v63  ;;  %v3271_v6 = vmax.f32 %v3251_v14, 0.0 }
 0x442   : > { %v3289_v29 = vmax.f32 %v3270_v15, %v3271_v6  ;;  %v3177_v7 = vpop.f32.mrb[44].mxu1  ;;  %v5389_v6 = vld [vmem:[%s7092_s5 + $0x20] sm:$0xff]  }
 0x443   : > { %v3252_v16 = vadd.f32 %v6783_v3, %v3177_v7  ;;  %v3179_v38 = vpop.f32.mrb[45].mxu1 }
 0x444   : > { %v6794_v17 = vmax.f32 %v3288_v56, %v3289_v29  ;;  %v3253_v46 = vadd.f32 %v6787_v31, %v3179_v38  ;;  %v3181_v62 = vpop.f32.mrb[46].mxu1 }
 0x445   : > { %v3272_v8 = vmax.f32 %v3252_v16, 0.0  ;;  %v3254_v57 = vadd.f32 %v6783_v3, %v3181_v62  ;;  %v3183_v9 = vpop.f32.mrb[47].mxu1  ;;  %v5390_v62 = vld [vmem:[%s7092_s5 + $0x28] sm:$0xff]  }
 0x446   : > { %v3273_v51 = vmax.f32 %v3253_v46, 0.0  ;;  %v3255_v47 = vadd.f32 %v6787_v31, %v3183_v9  ;;  %v5393_v9 = vld [vmem:[%s7092_s5 + $0x80] sm:$0xff]  }
 0x447   : > { %v3274_v48 = vmax.f32 %v3254_v57, 0.0  ;;  %v5392_v57 = vld [vmem:[%s7092_s5 + $0x38] sm:$0xff]  }
 0x448   : > { %v3290_v58 = vmax.f32 %v3272_v8, %v3273_v51  ;;  %v3275_v19 = vmax.f32 %v3255_v47, 0.0  ;;  %v3303_v51 = vpack.c.bf16 %v6794_v17, %v6794_v17  ;;  %v5394_v47 = vld [vmem:[%s7092_s5 + $0x88] sm:$0xff]   ;;  %v5396_v17 = vld [vmem:[%s7092_s5 + $0x98] sm:$0xff]  }
 0x44a   : > { %v3291_v52 = vmax.f32 %v3274_v48, %v3275_v19  ;;  %v3187_v20 = vpop.f32.mrb[48].mxu1  ;;  %v5395_v48 = vld [vmem:[%s7092_s5 + $0x90] sm:$0xff]   ;;  %v5398_v19 = vld [vmem:[%s7092_s5 + $0xa8] sm:$0xff]  }
 0x44b   : > { %v3256_v5 = vadd.f32 %v6783_v3, %v3187_v20  ;;  %v3189_v21 = vpop.f32.mrb[49].mxu1  ;;  %v5400_v20 = vld [vmem:[%s7092_s5 + $0xb8] sm:$0xff]  }
 0x44c   : > { %v3299_v23 = vmax.f32 %v3290_v58, %v3291_v52  ;;  %v3257_v53 = vadd.f32 %v6787_v31, %v3189_v21  ;;  %v3191_v0 = vpop.f32.mrb[50].mxu1  ;;  %v5397_v58 = vld [vmem:[%s7092_s5 + $0xa0] sm:$0xff]   ;;  %v5399_v52 = vld [vmem:[%s7092_s5 + $0xb0] sm:$0xff]  }
 0x44d   : > { %v3276_v10 = vmax.f32 %v3256_v5, 0.0  ;;  %v3258_v37 = vadd.f32 %v6783_v3, %v3191_v0  ;;  %v3193_v49 = vpop.f32.mrb[51].mxu1  ;;  %v5401_v5 = vld [vmem:[%s7092_s5 + $0xc0] sm:$0xff]   ;;  %v5404_v0 = vld [vmem:[%s7092_s5 + $0xd8] sm:$0xff]  }
 0x44e   : > { %v3320_v50 = vpack.c.bf16 %v3299_v23, %v3299_v23  ;;  %v3277_v32 = vmax.f32 %v3257_v53, 0.0  ;;  %v3259_v30 = vadd.f32 %v6787_v31, %v3193_v49  ;;  %v5402_v23 = vld [vmem:[%s7092_s5 + $0xc8] sm:$0xff]   ;;  %v5403_v53 = vld [vmem:[%s7092_s5 + $0xd0] sm:$0xff]  }
 0x44f   : > { %v3278_v39 = vmax.f32 %v3258_v37, 0.0  ;;  %v5406_v37 = vld [vmem:[%s7092_s5 + $0xe8] sm:$0xff]   ;;  %v5407_v49 = vld [vmem:[%s7092_s5 + $0xf0] sm:$0xff]  }
 0x450   : > { %v3292_v12 = vmax.f32 %v3276_v10, %v3277_v32  ;;  %v3279_v60 = vmax.f32 %v3259_v30, 0.0  ;;  %4686 = vmatmul.mubr.bf16.vlgmr.msra.gmra.mrb[60].mxu1 %v3320_v50  ;;  %v5405_v10 = vld [vmem:[%s7092_s5 + $0xe0] sm:$0xff]   ;;  %v5410_v30 = vld [vmem:[%s7092_s5 + $0x108] sm:$0xff]  }
 0x451   : > { %4690 = vmatpush3.bf16.msra.mxu1 %v5385_v11  ;;  %4705 = vmatprep.mubr.msk.bf16.mxu1 %vm5499_vm1, %v5498_v33  ;;  %v5408_v11 = vld [vmem:[%s7092_s5 + $0xf8] sm:$0xff]   ;;  %v5409_v50 = vld [vmem:[%s7092_s5 + $0x100] sm:$0xff]  }
 0x452   : > { %v3293_v55 = vmax.f32 %v3278_v39, %v3279_v60  ;;  %v3197_v2 = vpop.f32.mrb[52].mxu1  ;;  %4691 = vmatprep.subr.bf16.mxu1 %v5498_v33  ;;  %v5411_v39 = vld [vmem:[%s7092_s5 + $0x110] sm:$0xff]   ;;  %v5413_v60 = vld [vmem:[%s7092_s5 + $0x120] sm:$0xff]  }
 0x453   : > { %v3260_v61 = vadd.f32 %v6783_v3, %v3197_v2  ;;  %v3199_v41 = vpop.f32.mrb[53].mxu1  ;;  %v5416_v2 = vld [vmem:[%s7092_s5 + $0x138] sm:$0xff]  }
 0x454   : > { %v6813_v54 = vmax.f32 %v3292_v12, %v3293_v55  ;;  %v3261_v40 = vadd.f32 %v6787_v31, %v3199_v41  ;;  %v3201_v22 = vpop.f32.mrb[54].mxu1  ;;  %v5412_v12 = vld [vmem:[%s7092_s5 + $0x118] sm:$0xff]   ;;  %v5415_v55 = vld [vmem:[%s7092_s5 + $0x130] sm:$0xff]   ;;  %v5417_v41 = vld [vmem:[%s7094_s7] sm:$0xff]  }
 0x455   : > { %v3280_v18 = vmax.f32 %v3260_v61, 0.0  ;;  %v3262_v45 = vadd.f32 %v6783_v3, %v3201_v22  ;;  %4692 = vmatpush3.bf16.msra.mxu1 %v5386_v34  ;;  %v3203_v13 = vpop.f32.mrb[55].mxu1  ;;  %v5414_v34 = vld [vmem:[%s7092_s5 + $0x128] sm:$0xff]   ;;  %v5420_v22 = vld [vmem:[%s7094_s7 + $0x18] sm:$0xff]  }
 0x456   : > { %v3281_v1 = vmax.f32 %v3261_v40, 0.0  ;;  %v3263_v24 = vadd.f32 %v6787_v31, %v3203_v13  ;;  %4693 = vmatprep.subr.bf16.mxu1 %v5498_v33  ;;  %v3514_v21 = vpack.c.bf16 %v6813_v54, %v6813_v54  ;;  %v5418_v54 = vld [vmem:[%s7094_s7 + $0x8] sm:$0xff]   ;;  %v5419_v40 = vld [vmem:[%s7094_s7 + $0x10] sm:$0xff]  }
 0x457   : > { %v3282_v25 = vmax.f32 %v3262_v45, 0.0  ;;  %v5422_v45 = vld [vmem:[%s7094_s7 + $0x28] sm:$0xff]  }
 0x458   : > { %v3294_v43 = vmax.f32 %v3280_v18, %v3281_v1  ;;  %v3283_v26 = vmax.f32 %v3263_v24, 0.0  ;;  %v5421_v18 = vld [vmem:[%s7094_s7 + $0x20] sm:$0xff]  }
 0x459   : > { %4694 = vmatpush3.bf16.msra.mxu1 %v5387_v27  ;;  %v5423_v27 = vld [vmem:[%s7094_s7 + $0x30] sm:$0xff]  }
 0x45a   : > { %v3295_v59 = vmax.f32 %v3282_v25, %v3283_v26  ;;  %v3207_v42 = vpop.f32.mrb[56].mxu1  ;;  %4695 = vmatprep.subr.bf16.mxu1 %v5498_v33 }
 0x45b   : > { %v3264_v44 = vadd.f32 %v6783_v3, %v3207_v42  ;;  %v3209_v35 = vpop.f32.mrb[57].mxu1 }
 0x45c   : > { %v6827_v36 = vmax.f32 %v3294_v43, %v3295_v59  ;;  %v3265_v4 = vadd.f32 %v6787_v31, %v3209_v35  ;;  %v3211_v63 = vpop.f32.mrb[58].mxu1  ;;  %v5424_v43 = vld [vmem:[%s7094_s7 + $0x38] sm:$0xff]  }
 0x45d   : > { %v3284_v14 = vmax.f32 %v3264_v44, 0.0  ;;  %v3266_v15 = vadd.f32 %v6783_v3, %v3211_v63  ;;  %4696 = vmatpush3.bf16.msra.mxu1 %v5388_v28  ;;  %v3213_v56 = vpop.f32.mrb[59].mxu1 }
 0x45e   : > { %v3285_v29 = vmax.f32 %v3265_v4, 0.0  ;;  %v3267_v7 = vadd.f32 %v6787_v31, %v3213_v56  ;;  %4697 = vmatprep.subr.bf16.mxu1 %v5498_v33  ;;  %v5391_v31 = vld [vmem:[%s7092_s5 + $0x30] sm:$0xff]   ;;  %v3621_v32 = vpack.c.bf16 %v6827_v36, %v6827_v36 }
 0x45f   : > { %v3286_v16 = vmax.f32 %v3266_v15, 0.0 }
 0x460   : > { %v3296_v38 = vmax.f32 %v3284_v14, %v3285_v29  ;;  %v3287_v46 = vmax.f32 %v3267_v7, 0.0 }
 0x461   : > { %4698 = vmatpush3.bf16.msra.mxu1 %v5389_v6 }
 0x462   : > { %v3297_v3 = vmax.f32 %v3286_v16, %v3287_v46  ;;  %4699 = vmatprep.subr.bf16.mxu1 %v5498_v33 }
 0x464   : > { %v6840_v8 = vmax.f32 %v3296_v38, %v3297_v3  ;;  %v4583_v38 = vld [vmem:[%s7093_s6] ss:$0 sm:$0xff] }
 0x465   : > { %4700 = vmatpush3.bf16.msra.mxu1 %v5390_v62 }
 0x466   : > { %4701 = vmatprep.subr.bf16.mxu1 %v5498_v33  ;;  %v3728_v61 = vpack.c.bf16 %v6840_v8, %v6840_v8 }
 0x469   : > { %4702 = vmatpush3.bf16.msra.mxu1 %v5391_v31 }
 0x46a   : > { %4703 = vmatprep.subr.bf16.mxu1 %v5498_v33 }
 0x46d   : > { %4704 = vmatpush3.bf16.msra.mxu1 %v5392_v57 }
 0x46e   : > { %4709 = vmatprep.subr.bf16.mxu1 %v5498_v33 }
 0x470   : > { %4706 = vmatmul.mubr.bf16.vlgmr.msra.gmra.mrb[64].mxu1 %v3303_v51 }
 0x471   : > { %4710 = vmatpush3.bf16.msra.mxu1 %v5393_v9  ;;  %4725 = vmatprep.mubr.msk.bf16.mxu1 %vm5499_vm1, %v5498_v33  ;;  %v5425_v9 = vld [vmem:[%s7096_s9] sm:$0xff]  }
 0x472   : > { %4711 = vmatprep.subr.bf16.mxu1 %v5498_v33 }
 0x475   : > { %4712 = vmatpush3.bf16.msra.mxu1 %v5394_v47  ;;  %v5426_v47 = vld [vmem:[%s7096_s9 + $0x8] sm:$0xff]  }
 0x476   : > { %4713 = vmatprep.subr.bf16.mxu1 %v5498_v33 }
 0x479   : > { %4714 = vmatpush3.bf16.msra.mxu1 %v5395_v48  ;;  %v5427_v48 = vld [vmem:[%s7096_s9 + $0x10] sm:$0xff]  }
 0x47a   : > { %4715 = vmatprep.subr.bf16.mxu1 %v5498_v33 }
 0x47d   : > { %4716 = vmatpush3.bf16.msra.mxu1 %v5396_v17  ;;  %v5428_v17 = vld [vmem:[%s7096_s9 + $0x18] sm:$0xff]  }
 0x47e   : > { %4717 = vmatprep.subr.bf16.mxu1 %v5498_v33 }
 0x481   : > { %4718 = vmatpush3.bf16.msra.mxu1 %v5397_v58  ;;  %v5429_v58 = vld [vmem:[%s7096_s9 + $0x20] sm:$0xff]  }
 0x482   : > { %4719 = vmatprep.subr.bf16.mxu1 %v5498_v33 }
 0x485   : > { %4720 = vmatpush3.bf16.msra.mxu1 %v5398_v19  ;;  %v5430_v19 = vld [vmem:[%s7096_s9 + $0x28] sm:$0xff]  }
 0x486   : > { %4721 = vmatprep.subr.bf16.mxu1 %v5498_v33 }
 0x489   : > { %4722 = vmatpush3.bf16.msra.mxu1 %v5399_v52  ;;  %v5431_v52 = vld [vmem:[%s7096_s9 + $0x30] sm:$0xff]  }
 0x48a   : > { %4723 = vmatprep.subr.bf16.mxu1 %v5498_v33 }
 0x48d   : > { %4724 = vmatpush3.bf16.msra.mxu1 %v5400_v20  ;;  %v5432_v20 = vld [vmem:[%s7096_s9 + $0x38] sm:$0xff]  }
 0x48e   : > { %4729 = vmatprep.subr.bf16.mxu1 %v5498_v33 }
 0x490   : > { %4726 = vmatmul.mubr.bf16.vlgmr.msra.gmra.mrb[68].mxu1 %v3514_v21 }
 0x491   : > { %4730 = vmatpush3.bf16.msra.mxu1 %v5401_v5  ;;  %4745 = vmatprep.mubr.msk.bf16.mxu1 %vm5499_vm1, %v5498_v33  ;;  %v4584_v5 = vld [vmem:[%s7095_s8] ss:$0 sm:$0xff] }
 0x492   : > { %4731 = vmatprep.subr.bf16.mxu1 %v5498_v33 }
 0x495   : > { %4732 = vmatpush3.bf16.msra.mxu1 %v5402_v23 }
 0x496   : > { %4733 = vmatprep.subr.bf16.mxu1 %v5498_v33 }
 0x499   : > { %4734 = vmatpush3.bf16.msra.mxu1 %v5403_v53 }
 0x49a   : > { %4735 = vmatprep.subr.bf16.mxu1 %v5498_v33 }
 0x49d   : > { %4736 = vmatpush3.bf16.msra.mxu1 %v5404_v0 }
 0x49e   : > { %4737 = vmatprep.subr.bf16.mxu1 %v5498_v33 }
 0x4a1   : > { %4738 = vmatpush3.bf16.msra.mxu1 %v5405_v10 }
 0x4a2   : > { %4739 = vmatprep.subr.bf16.mxu1 %v5498_v33 }
 0x4a5   : > { %4740 = vmatpush3.bf16.msra.mxu1 %v5406_v37 }
 0x4a6   : > { %4741 = vmatprep.subr.bf16.mxu1 %v5498_v33 }
 0x4a9   : > { %4742 = vmatpush3.bf16.msra.mxu1 %v5407_v49 }
 0x4aa   : > { %4743 = vmatprep.subr.bf16.mxu1 %v5498_v33 }
 0x4ad   : > { %4744 = vmatpush3.bf16.msra.mxu1 %v5408_v11 }
 0x4ae   : > { %4749 = vmatprep.subr.bf16.mxu1 %v5498_v33 }
 0x4b0   : > { %4746 = vmatmul.mubr.bf16.vlgmr.msra.gmra.mrb[72].mxu1 %v3621_v32 }
 0x4b1   : > { %4750 = vmatpush3.bf16.msra.mxu1 %v5409_v50  ;;  %4765 = vmatprep.mubr.msk.bf16.mxu1 %vm5499_vm1, %v5498_v33 }
 0x4b2   : > { %4751 = vmatprep.subr.bf16.mxu1 %v5498_v33 }
 0x4b5   : > { %4752 = vmatpush3.bf16.msra.mxu1 %v5410_v30 }
 0x4b6   : > { %4753 = vmatprep.subr.bf16.mxu1 %v5498_v33 }
 0x4b9   : > { %4754 = vmatpush3.bf16.msra.mxu1 %v5411_v39 }
 0x4ba   : > { %4755 = vmatprep.subr.bf16.mxu1 %v5498_v33 }
 0x4bd   : > { %4756 = vmatpush3.bf16.msra.mxu1 %v5412_v12 }
 0x4be   : > { %4757 = vmatprep.subr.bf16.mxu1 %v5498_v33 }
 0x4c1   : > { %4758 = vmatpush3.bf16.msra.mxu1 %v5413_v60 }
 0x4c2   : > { %4759 = vmatprep.subr.bf16.mxu1 %v5498_v33 }
 0x4c5   : > { %4760 = vmatpush3.bf16.msra.mxu1 %v5414_v34 }
 0x4c6   : > { %4761 = vmatprep.subr.bf16.mxu1 %v5498_v33 }
 0x4c9   : > { %4762 = vmatpush3.bf16.msra.mxu1 %v5415_v55 }
 0x4ca   : > { %4763 = vmatprep.subr.bf16.mxu1 %v5498_v33 }
 0x4cd   : > { %4764 = vmatpush3.bf16.msra.mxu1 %v5416_v2 }
 0x4ce   : > { %4769 = vmatprep.subr.bf16.mxu1 %v5498_v33 }
 0x4d0   : > { %4766 = vmatmul.mubr.bf16.vlgmr.msra.gmra.mrb[76].mxu1 %v3728_v61 }
 0x4d1   : > { %4785 = vmatprep.mubr.msk.bf16.mxu1 %vm5499_vm1, %v5498_v33  ;;  %4770 = vmatpush3.bf16.msra.mxu1 %v5417_v41 }
 0x4d2   : > { %4771 = vmatprep.subr.bf16.mxu1 %v5498_v33 }
 0x4d5   : > { %4772 = vmatpush3.bf16.msra.mxu1 %v5418_v54 }
 0x4d6   : > { %4773 = vmatprep.subr.bf16.mxu1 %v5498_v33 }
 0x4d9   : > { %4774 = vmatpush3.bf16.msra.mxu1 %v5419_v40 }
 0x4da   : > { %4775 = vmatprep.subr.bf16.mxu1 %v5498_v33 }
 0x4dd   : > { %4776 = vmatpush3.bf16.msra.mxu1 %v5420_v22 }
 0x4de   : > { %4777 = vmatprep.subr.bf16.mxu1 %v5498_v33 }
 0x4e1   : > { %4778 = vmatpush3.bf16.msra.mxu1 %v5421_v18 }
 0x4e2   : > { %4779 = vmatprep.subr.bf16.mxu1 %v5498_v33 }
 0x4e5   : > { %4780 = vmatpush3.bf16.msra.mxu1 %v5422_v45 }
 0x4e6   : > { %4781 = vmatprep.subr.bf16.mxu1 %v5498_v33 }
 0x4e9   : > { %4782 = vmatpush3.bf16.msra.mxu1 %v5423_v27 }
 0x4ea   : > { %4783 = vmatprep.subr.bf16.mxu1 %v5498_v33 }
 0x4ed   : > { %4784 = vmatpush3.bf16.msra.mxu1 %v5424_v43 }
 0x4ee   : > { %4789 = vmatprep.subr.bf16.mxu1 %v5498_v33 }
 0x523   : > { %v3420_v13 = vpop.f32.mrb[60].mxu1 }
 0x524   : > { %v4687_v1 = vpop.f32.mrb[61].mxu1 }
 0x525   : > { %v3423_v24 = vpop.f32.mrb[62].mxu1 }
 0x526   : > { %v4688_v25 = vpop.f32.mrb[63].mxu1 }
 0x543   : > { %v3508_v26 = vpop.f32.mrb[64].mxu1 }
 0x544   : > { %v3509_v28 = vadd.f32 %v3508_v26, %v3420_v13  ;;  %v4707_v59 = vpop.f32.mrb[65].mxu1 }
 0x545   : > { %v3511_v42 = vpop.f32.mrb[66].mxu1 }
 0x546   : > { %v4708_v44 = vpop.f32.mrb[67].mxu1 }
 0x563   : > { %v3614_v35 = vpop.f32.mrb[68].mxu1 }
 0x564   : > { %v3620_v36 = vadd.f32 %v3614_v35, %v3509_v28  ;;  %v4727_v4 = vpop.f32.mrb[69].mxu1 }
 0x565   : > { %v3617_v63 = vpop.f32.mrb[70].mxu1 }
 0x566   : > { %v4728_v14 = vpop.f32.mrb[71].mxu1 }
 0x583   : > { %v3721_v15 = vpop.f32.mrb[72].mxu1 }
 0x584   : > { %v3727_v56 = vadd.f32 %v3721_v15, %v3620_v36  ;;  %v4747_v6 = vpop.f32.mrb[73].mxu1 }
 0x585   : > { %v3724_v29 = vpop.f32.mrb[74].mxu1 }
 0x586   : > { %v4748_v7 = vpop.f32.mrb[75].mxu1 }
 0x5a3   : > { %v3828_v16 = vpop.f32.mrb[76].mxu1 }
 0x5a4   : > { %v3834_v46 = vadd.f32 %v3828_v16, %v3727_v56  ;;  %v4767_v62 = vpop.f32.mrb[77].mxu1 }
 0x5a5   : > { %v3831_v3 = vpop.f32.mrb[78].mxu1 }
 0x5a6   : > { %v3842_v8 = vadd.f32 %v4583_v38, %v3834_v46  ;;  %v4768_v31 = vpop.f32.mrb[79].mxu1 }
 0x5a8   : > { %v3843_v57 = vmax.f32 %v3842_v8, 0.0 }
 0x5aa   : > { %v3844_v51 = vpack.c.bf16 %v3843_v57, %v3843_v57 }
 0x5ac   : > { %4786 = vmatmul.mubr.bf16.vlgmr.msra.gmra.mrb[80].mxu1 %v3844_v51 }
 0x5ad   : > { %4790 = vmatpush3.bf16.msra.mxu1 %v5425_v9  ;;  %4805 = vmatprep.mubr.msk.bf16.mxu1 %vm5499_vm1, %v5498_v33 }
 0x5ae   : > { %4791 = vmatprep.subr.bf16.mxu1 %v5498_v33 }
 0x5b1   : > { %4792 = vmatpush3.bf16.msra.mxu1 %v5426_v47 }
 0x5b2   : > { %4793 = vmatprep.subr.bf16.mxu1 %v5498_v33 }
 0x5b5   : > { %4794 = vmatpush3.bf16.msra.mxu1 %v5427_v48 }
 0x5b6   : > { %4795 = vmatprep.subr.bf16.mxu1 %v5498_v33 }
 0x5b9   : > { %4796 = vmatpush3.bf16.msra.mxu1 %v5428_v17 }
 0x5ba   : > { %4797 = vmatprep.subr.bf16.mxu1 %v5498_v33 }
 0x5bd   : > { %4798 = vmatpush3.bf16.msra.mxu1 %v5429_v58 }
 0x5be   : > { %4799 = vmatprep.subr.bf16.mxu1 %v5498_v33 }
 0x5c1   : > { %4800 = vmatpush3.bf16.msra.mxu1 %v5430_v19 }
 0x5c2   : > { %4801 = vmatprep.subr.bf16.mxu1 %v5498_v33 }
 0x5c5   : > { %4802 = vmatpush3.bf16.msra.mxu1 %v5431_v52 }
 0x5c6   : > { %4803 = vmatprep.subr.bf16.mxu1 %v5498_v33  ;;  %v4593_v33 = vld [vmem:[%s7097_s10] ss:$0 sm:$0xff] }
 0x5c9   : > { %4804 = vmatpush3.bf16.msra.mxu1 %v5432_v20 }
 0x67f   : > { %v3950_v21 = vpop.f32.mrb[80].mxu1 }
 0x680   : > { %v3951_v23 = vadd.f32 %v4584_v5, %v3950_v21  ;;  %v4787_v53 = vpop.f32.mrb[81].mxu1 }
 0x681   : > { %v3953_v0 = vpop.f32.mrb[82].mxu1 }
 0x682   : > { %v3956_v10 = vmax.f32 %v3951_v23, 0.0  ;;  %v4788_v37 = vpop.f32.mrb[83].mxu1 }
 0x684   : > { %v3957_v49 = vpack.c.bf16 %v3956_v10, %v3956_v10 }
 0x686   : > { %4806 = vmatmul.mubr.bf16.vlgmr.msra.gmra.mrb[84].mxu1 %v3957_v49 }
 0x759   : > { %v4063_v11 = vpop.f32.mrb[84].mxu1 }
 0x75a   : > { %v4064_v50 = vadd.f32 %v4593_v33, %v4063_v11  ;;  %v4807_v32 = vpop.f32.mrb[85].mxu1 }
 0x75b   : > { %v4066_v30 = vpop.f32.mrb[86].mxu1 }
 0x75c   : > { %4069 = vst [vmem:[%s542_s13] sm:$0xff] %v4064_v50  ;;  %v4808_v39 = vpop.f32.mrb[87].mxu1 }
 0x75d   : > { %5446 = shalt.err (!%p5443_p5)
}
 0x75e   : > { %s5447_s30 = scalar_lea.hbm %s7043_s24, 128  ;;  %s5451_s14 = scalar_lea.hbm %s7098_s11, 256 }
 0x75f   : > { %p5448_p7 = scmp.ne.s32.totalorder %s7043_s24, %s5447_s30  ;;  %p5452_p12 = scmp.lt.u32.totalorder %s7043_s24, %s7098_s11 }
 0x760   : > { %p5453_p13 = scmp.lt.u32.totalorder %s5451_s14, %s5447_s30  ;;  %p5455_p1 = scmp.lt.u32.totalorder %s5447_s30, %s7043_s24 }
 0x761   : > { %p5449_p10 = pnand %p5448_p7, %p5599_p6 }
 0x762   : > { %p5454_p0 = por %p5453_p13, %p5452_p12 }
 0x763   : > { %p5450_p11 = pneg %p5449_p10 }
 0x764   : > { %p5456_p2 = por %p5455_p1, %p5454_p0 }
 0x766   : > { %p5457_p3 = pnand %p5456_p2, %p5450_p11 }
 0x768   : > { %5460 = shalt.err (!%p5457_p3)
}
 0x769   : > { %5125 = dma.vmem_to_hbm [thread:$0]  (%p5599_p6), %s7045_s15, 128, %s7043_s24, %s4071_s25  }
 0x76a PF: > { %s4096_s21 = sand.u32 1, %s5483_s17   ;;  %p5128_p4 = pnand %p4151_p9, %p5603_p8 }
 0x76b   : > { %s4097_s22 = scalar_lea.sflag [#allocation4], %s4096_s21 }
 0x76c   : > { %5478 = dma.done.wait (!%p5128_p4), %s4097_s22, 128  }
 0x76d   : > { %5480 = vsyncadd (!%p5128_p4), %s4097_s22, 4294967168  ;;  %p21_p5 = scmp.ge.s32.totalorder %s5584_s23, 4   ;;  %s7108_s17 = smov %s5487_s18 }
 0x76e   : > { %s7109_s18 = smov %s5491_s19  ;;  %s7110_s19 = smov %s5597_s26 }
 0x76f   : > { %s7111_s20 = smov %s5584_s23  ;;  %23 = sbr.rel (!%p21_p5) target bundleno = 3 (0x3), region = 154 }
 0x776   :  { %4102 = vsyncpa [#allocation4], 1 }
 0x777   :  { %4104 = vsyncpa [#allocation4 + $0x1], 1 }

</bundles_post_ra>
